<compile_context>
chip_gen: v5e
topology: v5e:2x2
jax: 0.10.0
libtpu: 0.0.40
codegen_flags: <defaults>
</compile_context>

<pallas_src>
import functools

import jax
import jax.numpy as jnp
from jax.experimental import pallas as pl
from jax.experimental.pallas import tpu as pltpu

_NORM_EPS = 1e-12                 # torch.nn.functional.normalize default eps
_EPS_SQ = _NORM_EPS * _NORM_EPS


def _round_up(x, m):
    return ((x + m - 1) // m) * m


def _vmem_budget_bytes():
    """Generation-aware scoped-VMEM budget (~3/8 of physical VMEM):
    ~48 MiB on v5e/v6e (128 MiB physical), ~24 MiB on v7x (64 MiB physical)."""
    try:
        cap = int(pltpu.get_tpu_info().vmem_capacity_bytes)
        return max(16 << 20, (cap * 3) // 8)
    except Exception:
        return 24 << 20


def _choose_tile_b(batch, embed_dim, itemsize, budget):
    """Largest batch tile (multiple of 128, <=4096) fitting the VMEM budget,
    while keeping at least 2 grid steps for megacore sharding when possible."""
    # Double-buffered inputs dominate: 3 tensors * 2 buffers * D * itemsize per
    # row, plus the lane-dense f32 output (2 buffers); leave ~2 MiB headroom.
    per_row = 3 * 2 * embed_dim * itemsize + 2 * 4
    cap_rows = max(128, (budget - (2 << 20)) // max(per_row, 1))
    tile = min(4096, cap_rows)
    if batch > 128:
        tile = min(tile, _round_up(-(-batch // 2), 128))   # >= 2 grid steps
    else:
        tile = 128
    return max(128, (tile // 128) * 128)


def _triplet_kernel(a_ref, p_ref, n_ref, o_ref, *, tile_b, batch, margin, p_norm):
    a = a_ref[...].astype(jnp.float32)       # (tile_b, D)
    pos = p_ref[...].astype(jnp.float32)
    neg = n_ref[...].astype(jnp.float32)

    if p_norm == 2:
        # dist(a_hat, b_hat)^2 = |a_hat|^2 + |b_hat|^2 - 2 (a.b)/(max(|a|,eps)max(|b|,eps))
        # Only 5 full-width products per element; everything else is per-row.
        ssa = jnp.sum(a * a, axis=-1)          # (tile_b,)
        ssp = jnp.sum(pos * pos, axis=-1)
        ssn = jnp.sum(neg * neg, axis=-1)
        dap = jnp.sum(a * pos, axis=-1)
        dan = jnp.sum(a * neg, axis=-1)

        inv_a = jax.lax.rsqrt(jnp.maximum(ssa, _EPS_SQ))   # 1 / max(|a|, eps)
        inv_p = jax.lax.rsqrt(jnp.maximum(ssp, _EPS_SQ))
        inv_n = jax.lax.rsqrt(jnp.maximum(ssn, _EPS_SQ))

        na2 = ssa * inv_a * inv_a              # == |a_hat|^2 (exactly, incl. eps clamp)
        np2 = ssp * inv_p * inv_p
        nn2 = ssn * inv_n * inv_n

        d2_pos = na2 + np2 - 2.0 * dap * (inv_a * inv_p)
        d2_neg = na2 + nn2 - 2.0 * dan * (inv_a * inv_n)
        dist_pos = jnp.sqrt(jnp.maximum(d2_pos, 0.0))
        dist_neg = jnp.sqrt(jnp.maximum(d2_neg, 0.0))
    else:
        # Generic p: explicit normalize + p-norm of the difference.
        def l2_normalize(x):
            ss = jnp.sum(x * x, axis=-1, keepdims=True)
            return x * jax.lax.rsqrt(jnp.maximum(ss, _EPS_SQ))

        a = l2_normalize(a)
        pos = l2_normalize(pos)
        neg = l2_normalize(neg)

        def pair_dist(x, y):
            d = jnp.abs(x - y)
            if p_norm == 1:
                return jnp.sum(d, axis=-1)
            s = jnp.sum(d ** p_norm, axis=-1)
            return s ** (1.0 / p_norm)

        dist_pos = pair_dist(a, pos)
        dist_neg = pair_dist(a, neg)

    losses = jnp.maximum(dist_pos - dist_neg + margin, 0.0)    # (tile_b,)
    losses = losses.reshape(1, tile_b)                          # lane-dense row

    # MANDATORY mask: the last (partial) block reads past B, so its tail rows
    # contain garbage; zero them so sum/mean stay exact (where() does not
    # propagate NaN from the unselected branch).
    col = jax.lax.broadcasted_iota(jnp.int32, (1, tile_b), 1)
    row = pl.program_id(0) * tile_b + col
    o_ref[...] = jnp.where(row < batch, losses, 0.0)


def triplet_margin_loss(anchors, positives, negatives, *, margin=1.0, p=2,
                        reduction="mean", tile_b=None):
    """anchors/positives/negatives: [B, D] float32 or bfloat16."""
    assert anchors.shape == positives.shape == negatives.shape
    B, D = anchors.shape
    itemsize = jnp.dtype(anchors.dtype).itemsize

    budget = _vmem_budget_bytes()
    if tile_b is None:
        tile_b = _choose_tile_b(B, D, itemsize, budget)
    tile_b = max(128, (int(tile_b) // 128) * 128)

    num_tiles = pl.cdiv(B, tile_b)
    total = num_tiles * tile_b                 # output is lane-dense, >= B

    in_spec = pl.BlockSpec((tile_b, D), lambda i: (i, 0))
    out_spec = pl.BlockSpec((1, tile_b), lambda i: (0, i))

    # Double-buffered input tiles + lane-dense output + headroom.
    vmem_needed = 2 * 3 * tile_b * D * itemsize + 2 * tile_b * 4 + (2 << 20)
    vmem_limit = int(min(max(vmem_needed, 16 << 20), budget))

    cost = pl.CostEstimate(
        flops=int(10 * B * D + 32 * B),
        transcendentals=int(5 * B),
        bytes_accessed=int(itemsize * 3 * B * D + 4 * B),
    )

    kernel = functools.partial(
        _triplet_kernel, tile_b=tile_b, batch=B, margin=float(margin), p_norm=p)

    losses = pl.pallas_call(
        kernel,
        out_shape=jax.ShapeDtypeStruct((1, total), jnp.float32),
        grid=(num_tiles,),
        in_specs=[in_spec, in_spec, in_spec],
        out_specs=out_spec,
        compiler_params=pltpu.CompilerParams(
            dimension_semantics=("parallel",),
            vmem_limit_bytes=vmem_limit,
        ),
        cost_estimate=cost,
    )(anchors, positives, negatives)

    if reduction == "none":
        return losses[0, :B]
    if reduction == "sum":
        return jnp.sum(losses)                 # masked tail rows are exactly 0
    if reduction == "mean":
        return jnp.sum(losses) / B
    raise ValueError(f"Invalid reduction mode: {reduction}")


def reference_triplet_loss(anchors, positives, negatives, *, margin=1.0, p=2,
                           reduction="mean"):
    """Pure-JAX reference matching the PyTorch module (normalize + torch.norm)."""
    def norml2(x):
        nrm = jnp.sqrt(jnp.sum(x * x, axis=1, keepdims=True))
        return x / jnp.maximum(nrm, _NORM_EPS)

    a = norml2(anchors)
    p_ = norml2(positives)
    n = norml2(negatives)
    dist_pos = jnp.sum(jnp.abs(a - p_) ** p, axis=1) ** (1.0 / p)
    dist_neg = jnp.sum(jnp.abs(a - n) ** p, axis=1) ** (1.0 / p)
    losses = jnp.maximum(dist_pos - dist_neg + margin, 0.0)
    if reduction == "none":
        return losses
    if reduction == "sum":
        return jnp.sum(losses)
    return jnp.mean(losses)


if __name__ == "__main__":
    # Small shapes consistent with the module: [batch_size, embed_dim].
    # B=200 (not a multiple of the tile) exercises the partial last block +
    # in-kernel mask; embed_dim=128 keeps the feature axis lane-dense.
    batch, embed_dim, margin = 200, 128, 1.0

    key = jax.random.PRNGKey(0)
    ka, kp, kn = jax.random.split(key, 3)
    anchors = jax.random.normal(ka, (batch, embed_dim), jnp.float32)
    positives = jax.random.normal(kp, (batch, embed_dim), jnp.float32)
    negatives = jax.random.normal(kn, (batch, embed_dim), jnp.float32)

    # Auto tile -> 128 rows, grid=(2,) (two parallel steps, masked tail block).
    loss_mean = triplet_margin_loss(anchors, positives, negatives,
                                    margin=margin, reduction="mean")
    loss_sum = triplet_margin_loss(anchors, positives, negatives,
                                   margin=margin, reduction="sum")
    loss_none = triplet_margin_loss(anchors, positives, negatives,
                                    margin=margin, reduction="none")
    loss_mean = jax.block_until_ready(loss_mean)
    loss_sum = jax.block_until_ready(loss_sum)
    loss_none = jax.block_until_ready(loss_none)

    ref_mean = reference_triplet_loss(anchors, positives, negatives,
                                      margin=margin, reduction="mean")
    ref_sum = reference_triplet_loss(anchors, positives, negatives,
                                     margin=margin, reduction="sum")
    ref_none = reference_triplet_loss(anchors, positives, negatives,
                                      margin=margin, reduction="none")

    assert loss_none.shape == (batch,)
    assert jnp.allclose(loss_none, ref_none, atol=1e-4, rtol=1e-4), "none mismatch"
    assert jnp.allclose(loss_mean, ref_mean, atol=1e-4, rtol=1e-4), "mean mismatch"
    assert jnp.allclose(loss_sum, ref_sum, atol=1e-3, rtol=1e-4), "sum mismatch"

    print("KERNEL_OK")
</pallas_src>

<mosaic_0001>
module attributes {stable_mosaic.version = 11 : i64} {
  func.func @_triplet_kernel(%arg0: i32, %arg1: memref<128x128xf32, #tpu.memory_space<vmem>>, %arg2: memref<128x128xf32, #tpu.memory_space<vmem>>, %arg3: memref<128x128xf32, #tpu.memory_space<vmem>>, %arg4: memref<1x128xf32, #tpu.memory_space<vmem>>) attributes {dimension_semantics = [#tpu.dimension_semantics<parallel>], iteration_bounds = array<i64: 2>, scalar_prefetch = 0 : i64, scratch_operands = 0 : i64, tpu.core_type = #tpu.core_type<tc>, window_params = [{transform_indices = @transform_0, window_bounds = array<i64: 128, 128>}, {transform_indices = @transform_1, window_bounds = array<i64: 128, 128>}, {transform_indices = @transform_2, window_bounds = array<i64: 128, 128>}, {transform_indices = @transform_3, window_bounds = array<i64: 1, 128>}]} {
    %c0 = arith.constant 0 : index
    %c0_0 = arith.constant 0 : index
    %0 = vector.load %arg1[%c0, %c0_0] : memref<128x128xf32, #tpu.memory_space<vmem>>, vector<128x128xf32>
    %c0_1 = arith.constant 0 : index
    %c0_2 = arith.constant 0 : index
    %1 = vector.load %arg2[%c0_1, %c0_2] : memref<128x128xf32, #tpu.memory_space<vmem>>, vector<128x128xf32>
    %c0_3 = arith.constant 0 : index
    %c0_4 = arith.constant 0 : index
    %2 = vector.load %arg3[%c0_3, %c0_4] : memref<128x128xf32, #tpu.memory_space<vmem>>, vector<128x128xf32>
    %3 = arith.mulf %0, %0 : vector<128x128xf32>
    %cst = arith.constant dense<0.000000e+00> : vector<128xf32>
    %4 = vector.multi_reduction <add>, %3, %cst [1] : vector<128x128xf32> to vector<128xf32>
    %5 = arith.mulf %1, %1 : vector<128x128xf32>
    %cst_5 = arith.constant dense<0.000000e+00> : vector<128xf32>
    %6 = vector.multi_reduction <add>, %5, %cst_5 [1] : vector<128x128xf32> to vector<128xf32>
    %7 = arith.mulf %2, %2 : vector<128x128xf32>
    %cst_6 = arith.constant dense<0.000000e+00> : vector<128xf32>
    %8 = vector.multi_reduction <add>, %7, %cst_6 [1] : vector<128x128xf32> to vector<128xf32>
    %9 = arith.mulf %0, %1 : vector<128x128xf32>
    %cst_7 = arith.constant dense<0.000000e+00> : vector<128xf32>
    %10 = vector.multi_reduction <add>, %9, %cst_7 [1] : vector<128x128xf32> to vector<128xf32>
    %11 = arith.mulf %0, %2 : vector<128x128xf32>
    %cst_8 = arith.constant dense<0.000000e+00> : vector<128xf32>
    %12 = vector.multi_reduction <add>, %11, %cst_8 [1] : vector<128x128xf32> to vector<128xf32>
    %cst_9 = arith.constant 1.000000e-24 : f32
    %13 = vector.broadcast %cst_9 : f32 to vector<128xf32>
    %14 = arith.maximumf %4, %13 : vector<128xf32>
    %15 = math.rsqrt %14 : vector<128xf32>
    %cst_10 = arith.constant 1.000000e-24 : f32
    %16 = vector.broadcast %cst_10 : f32 to vector<128xf32>
    %17 = arith.maximumf %6, %16 : vector<128xf32>
    %18 = math.rsqrt %17 : vector<128xf32>
    %cst_11 = arith.constant 1.000000e-24 : f32
    %19 = vector.broadcast %cst_11 : f32 to vector<128xf32>
    %20 = arith.maximumf %8, %19 : vector<128xf32>
    %21 = math.rsqrt %20 : vector<128xf32>
    %22 = arith.mulf %4, %15 : vector<128xf32>
    %23 = arith.mulf %22, %15 : vector<128xf32>
    %24 = arith.mulf %6, %18 : vector<128xf32>
    %25 = arith.mulf %24, %18 : vector<128xf32>
    %26 = arith.mulf %8, %21 : vector<128xf32>
    %27 = arith.mulf %26, %21 : vector<128xf32>
    %28 = arith.addf %23, %25 : vector<128xf32>
    %cst_12 = arith.constant 2.000000e+00 : f32
    %29 = vector.broadcast %cst_12 : f32 to vector<128xf32>
    %30 = arith.mulf %29, %10 : vector<128xf32>
    %31 = arith.mulf %15, %18 : vector<128xf32>
    %32 = arith.mulf %30, %31 : vector<128xf32>
    %33 = arith.subf %28, %32 : vector<128xf32>
    %34 = arith.addf %23, %27 : vector<128xf32>
    %cst_13 = arith.constant 2.000000e+00 : f32
    %35 = vector.broadcast %cst_13 : f32 to vector<128xf32>
    %36 = arith.mulf %35, %12 : vector<128xf32>
    %37 = arith.mulf %15, %21 : vector<128xf32>
    %38 = arith.mulf %36, %37 : vector<128xf32>
    %39 = arith.subf %34, %38 : vector<128xf32>
    %cst_14 = arith.constant 0.000000e+00 : f32
    %40 = vector.broadcast %cst_14 : f32 to vector<128xf32>
    %41 = arith.maximumf %33, %40 : vector<128xf32>
    %42 = math.sqrt %41 : vector<128xf32>
    %cst_15 = arith.constant 0.000000e+00 : f32
    %43 = vector.broadcast %cst_15 : f32 to vector<128xf32>
    %44 = arith.maximumf %39, %43 : vector<128xf32>
    %45 = math.sqrt %44 : vector<128xf32>
    %46 = arith.subf %42, %45 : vector<128xf32>
    %cst_16 = arith.constant 1.000000e+00 : f32
    %47 = vector.broadcast %cst_16 : f32 to vector<128xf32>
    %48 = arith.addf %46, %47 : vector<128xf32>
    %cst_17 = arith.constant 0.000000e+00 : f32
    %49 = vector.broadcast %cst_17 : f32 to vector<128xf32>
    %50 = arith.maximumf %48, %49 : vector<128xf32>
    %51 = vector.shape_cast %50 : vector<128xf32> to vector<1x128xf32>
    %52 = tpu.iota {dimensions = array<i32: 1>} : vector<1x128xi32>
    %c128_i32 = arith.constant 128 : i32
    %53 = arith.muli %arg0, %c128_i32 : i32
    %54 = vector.broadcast %53 : i32 to vector<1x128xi32>
    %55 = arith.addi %54, %52 : vector<1x128xi32>
    %c200_i32 = arith.constant 200 : i32
    %56 = vector.broadcast %c200_i32 : i32 to vector<1x128xi32>
    %57 = arith.cmpi slt, %55, %56 : vector<1x128xi32>
    %cst_18 = arith.constant 0.000000e+00 : f32
    %58 = vector.broadcast %cst_18 : f32 to vector<1x128xf32>
    %59 = arith.select %57, %51, %58 : vector<1x128xi1>, vector<1x128xf32>
    %c0_19 = arith.constant 0 : index
    %c0_20 = arith.constant 0 : index
    %60 = vector.load %arg4[%c0_19, %c0_20] : memref<1x128xf32, #tpu.memory_space<vmem>>, vector<1x128xf32>
    tpu.vector_store %arg4[%c0_19, %c0_20], %59 {strides = array<i32>} : memref<1x128xf32, #tpu.memory_space<vmem>>, vector<1x128xf32>,
    return
  }
  func.func @transform_0(%arg0: i32) -> (i32, i32) {
    %c0_i32 = arith.constant 0 : i32
    %c0_i32_0 = arith.constant 0 : i32
    return %arg0, %c0_i32 : i32, i32
  }
  func.func @transform_1(%arg0: i32) -> (i32, i32) {
    %c0_i32 = arith.constant 0 : i32
    %c0_i32_0 = arith.constant 0 : i32
    return %arg0, %c0_i32 : i32, i32
  }
  func.func @transform_2(%arg0: i32) -> (i32, i32) {
    %c0_i32 = arith.constant 0 : i32
    %c0_i32_0 = arith.constant 0 : i32
    return %arg0, %c0_i32 : i32, i32
  }
  func.func @transform_3(%arg0: i32) -> (i32, i32) {
    %c0_i32 = arith.constant 0 : i32
    %c0_i32_0 = arith.constant 0 : i32
    return %c0_i32, %arg0 : i32, i32
  }
}

</mosaic_0001>

<bundles_post_ra>
// kernel: tpu_custom_call.1
= control target key start
LH: loop header
LB: loop body
LE: loop exit
PB: predicated region body
PF: predicated region fallthrough
CT: control target
= control target key end

     0   :  { %8 = vsyncpa [#allocation3], 0  ;;  %s4834_s0 = inlined_call_operand.hbm [shape: f32[200,128], index: 0, kind: input, shape index: {}]   ;;  %s4835_s1 = inlined_call_operand.hbm [shape: f32[200,128], index: 1, kind: input, shape index: {}]   ;;  %s4836_s2 = inlined_call_operand.hbm [shape: f32[200,128], index: 2, kind: input, shape index: {}]   ;;  %s4837_s3 = inlined_call_operand.hbm [shape: f32[1,256], index: 3, kind: output, shape index: {}]  }
   0x1   :  { %10 = vsyncpa [#allocation3 + $0x1], 0 }
   0x2   :  { %11 = vsyncpa [#allocation6], 0 }
   0x3   :  { %13 = vsyncpa [#allocation6 + $0x1], 0 }
   0x4   :  { %14 = vsyncpa [#allocation4], 0 }
   0x5   :  { %16 = vsyncpa [#allocation4 + $0x1], 0  ;;  %s2520_s12 = smov 0   ;;  %s2522_s13 = smov 0  }
   0x6   :  { %s2524_s14 = smov 0   ;;  %s2526_s15 = smov 0  }
   0x7 LB: > { %s2541_s16 = sadd.s32 4294967295, %s2489_s15   ;;  %s2051_s17 = sadd.s32 4294967294, %s2489_s15   ;;  %s2489_s15 = sphi %s2526_s15, %s5051_s15   ;;  %s2485_s14 = sphi %s2524_s14, %s5050_s14   ;;  %s2481_s13 = sphi %s2522_s13, %s5049_s13   ;;  %s2477_s12 = sphi %s2520_s12, %s5048_s12  }
   0x8   : > { %s2545_s18 = sadd.s32 1, %s2489_s15   ;;  %s29_s19 = sadd.s32 1, %s2485_s14 }
   0x9   : > { %s26_s20 = ssub.s32 %s2489_s15, %s2545_s18  ;;  %p36_p0 = scmp.ne.s32.totalorder %s2485_s14, %s2481_s13 }
   0xa   : > { %p27_p1 = scmp.eq.s32.totalorder %s26_s20, 0  ;;  %p37_p2 = scmp.eq.s32.totalorder %s2489_s15, 0 }
   0xb   : > { %p42_p3 = scmp.ne.s32.totalorder %s2481_s13, %s2477_s12  ;;  %p43_p4 = scmp.eq.s32.totalorder %s2541_s16, 0 }
   0xc   : > { %s2557_s21 = scalar_select %p27_p1, %s2485_s14, %s29_s19  }
   0xd   : > { %p2559_p5 = por %p37_p2, %p36_p0  ;;  %p2563_p6 = por %p43_p4, %p42_p3 }
   0xe   : > { %p118_p7 = scmp.eq.s32.totalorder %s2541_s16, 1  ;;  %p124_p8 = scmp.eq.s32.totalorder %s2051_s17, 1 }
   0xf   : > { %p4838_p11 = scmp.ge.s32.totalorder %s2489_s15, 2 }
  0x10   : > { %p2568_p9 = por %p118_p7, %p36_p0  ;;  %p2572_p10 = por %p124_p8, %p42_p3 }
  0x11   : > { %140 = sbr.rel (%p4838_p11) target bundleno = 130 (0x82), region = 16 }
  0x12   : > { %s4896_s25 = scalar_select %p2572_p10, 1, 0 }
  0x16   : > { %143 = sbr.rel (!%p2559_p5) target bundleno = 58 (0x3a), region = 20  ;;  %s144_s26 = sand.u32 (%p2559_p5), 1, %s2485_s14  }
  0x17   : > { %s2055_s27 = sshll.u32 (%p2559_p5), %s2489_s15, 4  ;;  %s2054_s28 = sshll.u32 (%p2559_p5), %s144_s26, 7 }
  0x18   : > { %s150_s29 = ssub.s32 (%p2559_p5), 25, %s2055_s27  ;;  %s2586_s6 = scalar_lea.sflag (%p2559_p5), [#allocation3], %s144_s26 }
  0x19   : > { %p151_p12 = scmp.lt.s32.totalorder (%p2559_p5), %s150_s29, 16  ;;  %s148_s7 = scalar_lea.vmem (%p2559_p5), [#allocation2], %s2054_s28 }
  0x1b   : > { %s5053_s29 = smov (!%p151_p12, %s150_s29), 16 }
  0x1c   : > { %s2056_s30 = sshll.u32 %s5053_s29, 3 }
  0x1d   : > { %s154_s4 = ssub.s32 128, %s2056_s30 }
  0x1e   : > { %s155_s5 = sshll.u32 %s154_s4, 4 }
  0x1f   : > { %156 = vsyncadd %s2586_s6, %s155_s5  ;;  %p2589_p13 = scmp.ne.s32.totalorder %s2056_s30, 0  ;;  %s2082_s9 = sshll.u32 %s2489_s15, 7 }
  0x20   : > { %s159_s17 = scalar_lea.hbm %s4834_s0, %s2082_s9  ;;  %s2597_s19 = sshll.u32 %s148_s7, 4  ;;  %s164_s19 = int_to_ptr.vmem [resolvable:$true] %s2597_s19 }
  0x21   : > { %s161_s20 = sshll.u32 %s159_s17, 4  ;;  %s2060_s26 = sshll.u32 %s5053_s29, 7  ;;  %s2600_s20 = int_to_ptr.hbm [resolvable:$true] %s161_s20 }
  0x22   : > { %s2302_s27 = sshra.s32 %s2600_s20, 4  ;;  %s2304_s28 = sshrl.u32 %s2060_s26, 4  ;;  %s2303_s27 = int_to_ptr.hbm [resolvable:$true] %s2302_s27 }
  0x23   : > { %s2309_s30 = scalar_lea.hbm %s2303_s27, %s2304_s28  ;;  %s2313_s7 = scalar_lea.hbm %s4834_s0, 200 }
  0x24   : > { %p2310_p0 = scmp.ne.s32.totalorder %s2303_s27, %s2309_s30  ;;  %p2314_p3 = scmp.lt.s32.totalorder %s2303_s27, %s4834_s0 }
  0x25   : > { %p2315_p4 = scmp.lt.s32.totalorder %s2313_s7, %s2309_s30 }
  0x26   : > { %p2311_p1 = pnand %p2310_p0, %p2589_p13 }
  0x27   : > { %p2316_p7 = por %p2315_p4, %p2314_p3 }
  0x28   : > { %p2312_p2 = pneg %p2311_p1 }
  0x2a   : > { %p2317_p8 = pnand %p2316_p7, %p2312_p2 }
  0x2c   : > { %2320 = shalt.err (!%p2317_p8)
}
  0x2d   : > { %s2321_s11 = sshra.s32 %s164_s19, 4  ;;  %s2491_s4 = smov [#allocation2]   ;;  %s2322_s11 = int_to_ptr.vmem [resolvable:$true] %s2321_s11 }
  0x2e   : > { %s2328_s17 = scalar_lea.vmem %s2322_s11, %s2304_s28  ;;  %s2332_s5 = scalar_lea.vmem %s2491_s4, 256 }
  0x2f   : > { %p2329_p12 = scmp.ne.s32.totalorder %s2322_s11, %s2328_s17  ;;  %p2334_p11 = scmp.lt.s32.totalorder %s2332_s5, %s2328_s17 }
  0x31   : > { %p2330_p0 = pnand %p2329_p12, %p2589_p13 }
  0x33   : > { %p2331_p1 = pneg %p2330_p0 }
  0x35   : > { %p2336_p10 = pnand %p2334_p11, %p2331_p1 }
  0x37   : > { %2339 = shalt.err (!%p2336_p10)
}
  0x38   : > { %s2492_s27 = smov 128   ;;  %s2493_s30 = smov 8  }
  0x39   : > { %169 = dma.hbm_to_vmem [thread:$0]  (%p2589_p13), %s2600_s20, %s2060_s26, %s164_s19, %s2586_s6, %s2492_s27, %s2492_s27, %s2493_s30  }
  0x3a PF: > { %172 = sbr.rel (!%p2559_p5) target bundleno = 94 (0x5e), region = 24  ;;  %s173_s28 = sand.u32 (%p2559_p5), 1, %s2489_s15  }
  0x3b   : > { %s175_s7 = sand.u32 (%p2559_p5), 1, %s2485_s14   ;;  %s2062_s10 = sshll.u32 (%p2559_p5), %s2489_s15, 4 }
  0x3c   : > { %s2061_s9 = sshll.u32 (%p2559_p5), %s175_s7, 7  ;;  %s179_s11 = ssub.s32 (%p2559_p5), 25, %s2062_s10 }
  0x3d   : > { %p180_p10 = scmp.lt.s32.totalorder (%p2559_p5), %s179_s11, 16  ;;  %s2634_s6 = scalar_lea.sflag (%p2559_p5), [#allocation6], %s173_s28 }
  0x3e   : > { %s177_s19 = scalar_lea.vmem (%p2559_p5), [#allocation5], %s2061_s9 }
  0x3f   : > { %s5055_s11 = smov (!%p180_p10, %s179_s11), 16 }
  0x40   : > { %s2063_s8 = sshll.u32 %s5055_s11, 3 }
  0x41   : > { %s183_s17 = ssub.s32 128, %s2063_s8 }
  0x42   : > { %s184_s29 = sshll.u32 %s183_s17, 4 }
  0x43   : > { %185 = vsyncadd %s2634_s6, %s184_s29  ;;  %p2637_p11 = scmp.ne.s32.totalorder %s2063_s8, 0  ;;  %s2083_s26 = sshll.u32 %s2489_s15, 7 }
  0x44   : > { %s188_s27 = scalar_lea.hbm %s4835_s1, %s2083_s26  ;;  %s2645_s30 = sshll.u32 %s177_s19, 4  ;;  %s193_s30 = int_to_ptr.vmem [resolvable:$true] %s2645_s30 }
  0x45   : > { %s190_s28 = sshll.u32 %s188_s27, 4  ;;  %s2067_s7 = sshll.u32 %s5055_s11, 7  ;;  %s2648_s28 = int_to_ptr.hbm [resolvable:$true] %s190_s28 }
  0x46   : > { %s2341_s9 = sshra.s32 %s2648_s28, 4  ;;  %s2343_s10 = sshrl.u32 %s2067_s7, 4  ;;  %s2342_s9 = int_to_ptr.hbm [resolvable:$true] %s2341_s9 }
  0x47   : > { %s2348_s8 = scalar_lea.hbm %s2342_s9, %s2343_s10  ;;  %s2352_s19 = scalar_lea.hbm %s4835_s1, 200 }
  0x48   : > { %p2349_p13 = scmp.ne.s32.totalorder %s2342_s9, %s2348_s8  ;;  %p2353_p4 = scmp.lt.s32.totalorder %s2342_s9, %s4835_s1 }
  0x49   : > { %p2354_p7 = scmp.lt.s32.totalorder %s2352_s19, %s2348_s8 }
  0x4a   : > { %p2350_p2 = pnand %p2349_p13, %p2637_p11 }
  0x4b   : > { %p2355_p8 = por %p2354_p7, %p2353_p4 }
  0x4c   : > { %p2351_p3 = pneg %p2350_p2 }
  0x4e   : > { %p2356_p12 = pnand %p2355_p8, %p2351_p3 }
  0x50   : > { %2359 = shalt.err (!%p2356_p12)
}
  0x51   : > { %s2360_s5 = sshra.s32 %s193_s30, 4  ;;  %s2494_s17 = smov [#allocation5]   ;;  %s2361_s5 = int_to_ptr.vmem [resolvable:$true] %s2360_s5 }
  0x52   : > { %s2367_s27 = scalar_lea.vmem %s2361_s5, %s2343_s10  ;;  %s2371_s29 = scalar_lea.vmem %s2494_s17, 256 }
  0x53   : > { %p2368_p0 = scmp.ne.s32.totalorder %s2361_s5, %s2367_s27  ;;  %p2373_p13 = scmp.lt.s32.totalorder %s2371_s29, %s2367_s27 }
  0x55   : > { %p2369_p1 = pnand %p2368_p0, %p2637_p11 }
  0x57   : > { %p2370_p10 = pneg %p2369_p1 }
  0x59   : > { %p2375_p2 = pnand %p2373_p13, %p2370_p10 }
  0x5b   : > { %2378 = shalt.err (!%p2375_p2)
}
  0x5c   : > { %s2495_s9 = smov 128   ;;  %s2496_s8 = smov 8  }
  0x5d   : > { %198 = dma.hbm_to_vmem [thread:$0]  (%p2637_p11), %s2648_s28, %s2067_s7, %s193_s30, %s2634_s6, %s2495_s9, %s2495_s9, %s2496_s8  }
  0x5e PF: > { %201 = sbr.rel (!%p2559_p5) target bundleno = 130 (0x82), region = 28  ;;  %s202_s10 = sand.u32 (%p2559_p5), 1, %s2489_s15  }
  0x5f   : > { %s204_s19 = sand.u32 (%p2559_p5), 1, %s2485_s14   ;;  %s2069_s4 = sshll.u32 (%p2559_p5), %s2489_s15, 4 }
  0x60   : > { %s2068_s26 = sshll.u32 (%p2559_p5), %s204_s19, 7  ;;  %s208_s5 = ssub.s32 (%p2559_p5), 25, %s2069_s4 }
  0x61   : > { %p209_p3 = scmp.lt.s32.totalorder (%p2559_p5), %s208_s5, 16  ;;  %s2682_s6 = scalar_lea.sflag (%p2559_p5), [#allocation6], %s202_s10 }
  0x62   : > { %s206_s22 = scalar_lea.vmem (%p2559_p5), [#allocation7], %s2068_s26 }
  0x63   : > { %s5057_s5 = smov (!%p209_p3, %s208_s5), 16 }
  0x64   : > { %s2070_s20 = sshll.u32 %s5057_s5, 3 }
  0x65   : > { %s212_s27 = ssub.s32 128, %s2070_s20 }
  0x66   : > { %s213_s11 = sshll.u32 %s212_s27, 4 }
  0x67   : > { %214 = vsyncadd %s2682_s6, %s213_s11  ;;  %p2685_p5 = scmp.ne.s32.totalorder %s2070_s20, 0  ;;  %s2084_s28 = sshll.u32 %s2489_s15, 7 }
  0x68   : > { %s217_s29 = scalar_lea.hbm %s4836_s2, %s2084_s28  ;;  %s2693_s9 = sshll.u32 %s206_s22, 4  ;;  %s222_s9 = int_to_ptr.vmem [resolvable:$true] %s2693_s9 }
  0x69   : > { %s219_s8 = sshll.u32 %s217_s29, 4  ;;  %s2074_s10 = sshll.u32 %s5057_s5, 7  ;;  %s2696_s8 = int_to_ptr.hbm [resolvable:$true] %s219_s8 }
  0x6a   : > { %s2380_s19 = sshra.s32 %s2696_s8, 4  ;;  %s2382_s26 = sshrl.u32 %s2074_s10, 4  ;;  %s2381_s19 = int_to_ptr.hbm [resolvable:$true] %s2380_s19 }
  0x6b   : > { %s2387_s4 = scalar_lea.hbm %s2381_s19, %s2382_s26  ;;  %s2391_s11 = scalar_lea.hbm %s4836_s2, 200 }
  0x6c   : > { %p2388_p11 = scmp.ne.s32.totalorder %s2381_s19, %s2387_s4  ;;  %p2392_p8 = scmp.lt.s32.totalorder %s2381_s19, %s4836_s2 }
  0x6d   : > { %p2393_p12 = scmp.lt.s32.totalorder %s2391_s11, %s2387_s4 }
  0x6e   : > { %p2389_p4 = pnand %p2388_p11, %p2685_p5 }
  0x6f   : > { %p2394_p0 = por %p2393_p12, %p2392_p8 }
  0x70   : > { %p2390_p7 = pneg %p2389_p4 }
  0x72   : > { %p2395_p1 = pnand %p2394_p0, %p2390_p7 }
  0x74   : > { %2398 = shalt.err (!%p2395_p1)
}
  0x75   : > { %s2399_s7 = sshra.s32 %s222_s9, 4  ;;  %s2497_s29 = smov [#allocation7]   ;;  %s2400_s7 = int_to_ptr.vmem [resolvable:$true] %s2399_s7 }
  0x76   : > { %s2406_s17 = scalar_lea.vmem %s2400_s7, %s2382_s26  ;;  %s2410_s20 = scalar_lea.vmem %s2497_s29, 256 }
  0x77   : > { %p2407_p10 = scmp.ne.s32.totalorder %s2400_s7, %s2406_s17  ;;  %p2412_p3 = scmp.lt.s32.totalorder %s2410_s20, %s2406_s17 }
  0x79   : > { %p2408_p13 = pnand %p2407_p10, %p2685_p5 }
  0x7b   : > { %p2409_p2 = pneg %p2408_p13 }
  0x7d   : > { %p2414_p11 = pnand %p2412_p3, %p2409_p2 }
  0x7f   : > { %2417 = shalt.err (!%p2414_p11)
}
  0x80   : > { %s2498_s19 = smov 128   ;;  %s2499_s4 = smov 8  }
  0x81   : > { %227 = dma.hbm_to_vmem [thread:$0]  (%p2685_p5), %s2696_s8, %s2074_s10, %s222_s9, %s2682_s6, %s2498_s19, %s2498_s19, %s2499_s4  }
  0x82 PF: > { %p2075_p4 = scmp.ge.s32.totalorder %s2489_s15, 1  ;;  %p229_p7 = scmp.lt.s32.totalorder %s2489_s15, 3 }
  0x84   : > { %p230_p8 = pnand %p2075_p4, %p229_p7 }
  0x86   : > { %233 = sbr.rel (%p230_p8) target bundleno = 603 (0x25b), region = 32 }
  0x8b   : > { %s2725_s26 = sand.u32 1, %s2481_s13  }
  0x8c   : > { %s2728_s27 = sshll.u32 %s2725_s26, 7  ;;  %s236_s30 = scalar_lea.sflag [#allocation3], %s2725_s26 }
  0x8d   : > { %s2732_s5 = scalar_lea.vmem [#allocation2], %s2728_s27 }
  0x8e   : > { %2464 = dma.done.wait (%p2563_p6), %s236_s30, 2048  }
  0x8f   : > { %2466 = vsyncadd (%p2563_p6), %s236_s30, 4294965248  ;;  %s245_s6 = sand.u32 1, %s2541_s16   ;;  %s2740_s8 = scalar_lea.vmem [#allocation5], %s2728_s27 }
  0x90   : > { %s246_s9 = scalar_lea.sflag [#allocation6], %s245_s6 }
  0x91   : > { %2468 = dma.done.wait (%p2563_p6), %s246_s9, 4096  }
  0x92   : > { %2470 = vsyncadd (%p2563_p6), %s246_s9, 4294963200  ;;  %v2747_v0 = vld [vmem:[%s2732_s5 + $0x20] sm:$0xff]  ;;  %v2750_v1 = vld [vmem:[%s2732_s5 + $0x10] sm:$0xff]  ;;  %s2881_s23 = scalar_lea.vmem [#allocation7], %s2728_s27  ;;  %s2079_s10 = sshll.u32 %s2541_s16, 7 }
  0x93   : > { %v2753_v2 = vld [vmem:[%s2732_s5] sm:$0xff]  ;;  %v359_v3 = vmul.f32 %v2747_v0, %v2747_v0  ;;  %v357_v4 = vmul.f32 %v2750_v1, %v2750_v1  ;;  %v2762_v6 = vld [vmem:[%s2732_s5 + $0x28] sm:$0xff]  ;;  %v2765_v7 = vld [vmem:[%s2732_s5 + $0x18] sm:$0xff]  ;;  %s1938_s28 = scalar_lea.hbm %s4837_s3, %s2541_s16  ;;  %s291_s7 = scalar_lea.vmem [#allocation8], %s2725_s26 }
  0x94   : > { %v355_v5 = vmul.f32 %v2753_v2, %v2753_v2  ;;  %v2768_v8 = vld [vmem:[%s2732_s5 + $0x8] sm:$0xff]  ;;  %v360_v9 = vmul.f32 %v2762_v6, %v2762_v6  ;;  %v358_v10 = vmul.f32 %v2765_v7, %v2765_v7  ;;  %v2777_v12 = vld [vmem:[%s2732_s5 + $0x40] sm:$0xff]  ;;  %v2780_v13 = vld [vmem:[%s2732_s5 + $0x38] sm:$0xff]  ;;  %s1940_s17 = sshll.u32 %s291_s7, 4  ;;  %s1942_s29 = sshll.u32 %s1938_s28, 4  ;;  %s1941_s17 = int_to_ptr.vmem [resolvable:$true] %s1940_s17  ;;  %s1943_s29 = int_to_ptr.hbm [resolvable:$true] %s1942_s29 }
  0x95   : > { %379 = vadd.xlane.f32.xlu2 %v359_v3  ;;  %375 = vadd.xlane.f32.xlu1 %v357_v4  ;;  %v356_v11 = vmul.f32 %v2768_v8, %v2768_v8  ;;  %v2783_v14 = vld [vmem:[%s2732_s5 + $0x30] sm:$0xff]  ;;  %v363_v15 = vmul.f32 %v2777_v12, %v2777_v12  ;;  %v362_v16 = vmul.f32 %v2780_v13, %v2780_v13  ;;  %v2792_v18 = vld [vmem:[%s2732_s5 + $0x58] sm:$0xff]  ;;  %v2798_v20 = vld [vmem:[%s2732_s5 + $0x48] sm:$0xff]  ;;  %s1930_s16 = scalar_lea.sflag [#allocation4], %s2725_s26  ;;  %s2433_s20 = sshra.s32 %s1943_s29, 4  ;;  %s2434_s20 = int_to_ptr.hbm [resolvable:$true] %s2433_s20 }
  0x96   : > { %371 = vadd.xlane.f32.xlu0 %v355_v5  ;;  %v361_v17 = vmul.f32 %v2783_v14, %v2783_v14  ;;  %4900 = vst [vmem:[#allocation12_spill] sm:$0xff] %v2792_v18  ;;  %v2795_v19 = vld [vmem:[%s2732_s5 + $0x50] sm:$0xff]  ;;  %v366_v21 = vmul.f32 %v2792_v18, %v2792_v18  ;;  %v364_v23 = vmul.f32 %v2798_v20, %v2798_v20  ;;  %v320_v25 = vld [vmem:[%s2732_s5 + $0x68] sm:$0xff]  ;;  %v319_v26 = vld [vmem:[%s2732_s5 + $0x60] sm:$0xff]  ;;  %s2435_s19 = scalar_lea.hbm %s2434_s20, 1  ;;  %s2439_s30 = scalar_lea.hbm %s4837_s3, 2 }
  0x97   : > { %v365_v22 = vmul.f32 %v2795_v19, %v2795_v19  ;;  %v321_v24 = vld [vmem:[%s2732_s5 + $0x70] sm:$0xff]  ;;  %v368_v28 = vmul.f32 %v320_v25, %v320_v25  ;;  %v367_v29 = vmul.f32 %v319_v26, %v319_v26  ;;  %v2810_v30 = vld [vmem:[%s2740_s8 + $0x8] sm:$0xff]  ;;  %v2813_v31 = vld [vmem:[%s2740_s8] sm:$0xff]  ;;  %p2436_p6 = scmp.ne.s32.totalorder %s2434_s20, %s2435_s19  ;;  %p2440_p0 = scmp.lt.s32.totalorder %s2434_s20, %s4837_s3 }
  0x98   : > { %v369_v27 = vmul.f32 %v321_v24, %v321_v24  ;;  %v322_v32 = vld [vmem:[%s2732_s5 + $0x78] sm:$0xff]  ;;  %v404_v33 = vmul.f32 %v2810_v30, %v2810_v30  ;;  %v403_v34 = vmul.f32 %v2813_v31, %v2813_v31  ;;  %v2821_v36 = vld [vmem:[%s2740_s8 + $0x20] sm:$0xff]  ;;  %v2827_v38 = vld [vmem:[%s2740_s8 + $0x10] sm:$0xff]  ;;  %p2441_p1 = scmp.lt.s32.totalorder %s2439_s30, %s2435_s19 }
  0x99   : > { %v370_v35 = vmul.f32 %v322_v32, %v322_v32  ;;  %v2824_v37 = vld [vmem:[%s2740_s8 + $0x18] sm:$0xff]  ;;  %v407_v39 = vmul.f32 %v2821_v36, %v2821_v36  ;;  %v405_v41 = vmul.f32 %v2827_v38, %v2827_v38  ;;  %v2839_v43 = vld [vmem:[%s2740_s8 + $0x30] sm:$0xff]  ;;  %v2842_v44 = vld [vmem:[%s2740_s8 + $0x28] sm:$0xff]  ;;  %p2437_p5 = pnand %p2436_p6, %p2568_p9 }
  0x9a   : > { %v406_v40 = vmul.f32 %v2824_v37, %v2824_v37  ;;  %v2836_v42 = vld [vmem:[%s2740_s8 + $0x38] sm:$0xff]  ;;  %v409_v46 = vmul.f32 %v2839_v43, %v2839_v43  ;;  %v408_v47 = vmul.f32 %v2842_v44, %v2842_v44  ;;  %v2851_v48 = vld [vmem:[%s2740_s8 + $0x50] sm:$0xff]  ;;  %v2854_v49 = vld [vmem:[%s2740_s8 + $0x48] sm:$0xff]  ;;  %p2442_p10 = por %p2441_p1, %p2440_p0 }
  0x9b   : > { %v410_v45 = vmul.f32 %v2836_v42, %v2836_v42  ;;  %4901 = vst [vmem:[#allocation13_spill] sm:$0xff] %v2854_v49  ;;  %v2857_v50 = vld [vmem:[%s2740_s8 + $0x40] sm:$0xff]  ;;  %v413_v51 = vmul.f32 %v2851_v48, %v2851_v48  ;;  %v412_v52 = vmul.f32 %v2854_v49, %v2854_v49  ;;  %v2866_v54 = vld [vmem:[%s2740_s8 + $0x68] sm:$0xff]  ;;  %v2872_v56 = vld [vmem:[%s2740_s8 + $0x58] sm:$0xff]  ;;  %p2438_p12 = pneg %p2437_p5 }
  0x9c   : > { %v411_v53 = vmul.f32 %v2857_v50, %v2857_v50  ;;  %4902 = vst [vmem:[#allocation14_spill] sm:$0xff] %v2866_v54  ;;  %v2869_v55 = vld [vmem:[%s2740_s8 + $0x60] sm:$0xff]  ;;  %v416_v57 = vmul.f32 %v2866_v54, %v2866_v54  ;;  %v414_v59 = vmul.f32 %v2872_v56, %v2872_v56  ;;  %v338_v61 = vld [vmem:[%s2740_s8 + $0x78] sm:$0xff]  ;;  %v337_v62 = vld [vmem:[%s2740_s8 + $0x70] sm:$0xff] }
  0x9d   : > { %381 = vadd.xlane.f32.xlu2 %v360_v9  ;;  %377 = vadd.xlane.f32.xlu1 %v358_v10  ;;  %4903 = vst [vmem:[#allocation15_spill] sm:$0xff] %v2869_v55  ;;  %v415_v58 = vmul.f32 %v2869_v55, %v2869_v55  ;;  %v2884_v60 = vld [vmem:[%s2881_s23] sm:$0xff]  ;;  %v418_v3 = vmul.f32 %v338_v61, %v338_v61  ;;  %v2891_v5 = vld [vmem:[%s2881_s23 + $0x18] sm:$0xff]  ;;  %v2894_v9 = vld [vmem:[%s2881_s23 + $0x10] sm:$0xff]  ;;  %p2443_p13 = pnand %p2442_p10, %p2438_p12 }
  0x9e   : > { %373 = vadd.xlane.f32.xlu0 %v356_v11  ;;  %4904 = vst [vmem:[#allocation16_spill] sm:$0xff] %v2872_v56  ;;  %v451_v63 = vmul.f32 %v2884_v60, %v2884_v60  ;;  %v417_v4 = vmul.f32 %v337_v62, %v337_v62  ;;  %v2897_v10 = vld [vmem:[%s2881_s23 + $0x8] sm:$0xff]  ;;  %v454_v11 = vmul.f32 %v2891_v5, %v2891_v5 }
  0x9f   : > { %v2921_v26 = vld [vmem:[%s2881_s23 + $0x48] sm:$0xff] }
  0xa5   : > { %387 = vadd.xlane.f32.xlu2 %v363_v15  ;;  %385 = vadd.xlane.f32.xlu1 %v362_v16  ;;  %v453_v15 = vmul.f32 %v2894_v9, %v2894_v9  ;;  %v452_v16 = vmul.f32 %v2897_v10, %v2897_v10 }
  0xa6   : > { %383 = vadd.xlane.f32.xlu0 %v361_v17  ;;  %v2906_v17 = vld [vmem:[%s2881_s23 + $0x30] sm:$0xff] }
  0xad   : > { %393 = vadd.xlane.f32.xlu2 %v366_v21  ;;  %391 = vadd.xlane.f32.xlu1 %v365_v22  ;;  %v2909_v21 = vld [vmem:[%s2881_s23 + $0x28] sm:$0xff]  ;;  %v2912_v22 = vld [vmem:[%s2881_s23 + $0x20] sm:$0xff] }
  0xae   : > { %389 = vadd.xlane.f32.xlu0 %v364_v23  ;;  %v457_v23 = vmul.f32 %v2906_v17, %v2906_v17  ;;  %v456_v24 = vmul.f32 %v2909_v21, %v2909_v21  ;;  %v455_v25 = vmul.f32 %v2912_v22, %v2912_v22 }
  0xb5   : > { %399 = vadd.xlane.f32.xlu2 %v369_v27  ;;  %397 = vadd.xlane.f32.xlu1 %v368_v28  ;;  %v2924_v27 = vld [vmem:[%s2881_s23 + $0x40] sm:$0xff]  ;;  %v2927_v28 = vld [vmem:[%s2881_s23 + $0x38] sm:$0xff] }
  0xb6   : > { %395 = vadd.xlane.f32.xlu0 %v367_v29  ;;  %v460_v29 = vmul.f32 %v2921_v26, %v2921_v26  ;;  %v459_v32 = vmul.f32 %v2924_v27, %v2924_v27 }
  0xbd   : > { %421 = vadd.xlane.f32.xlu2 %v404_v33  ;;  %419 = vadd.xlane.f32.xlu1 %v403_v34  ;;  %v458_v33 = vmul.f32 %v2927_v28, %v2927_v28  ;;  %v2936_v34 = vld [vmem:[%s2881_s23 + $0x60] sm:$0xff] }
  0xbe   : > { %401 = vadd.xlane.f32.xlu0 %v370_v35  ;;  %4905 = vst [vmem:[#allocation17_spill] sm:$0xff] %v2936_v34  ;;  %v2939_v35 = vld [vmem:[%s2881_s23 + $0x58] sm:$0xff] }
  0xbf   : > { %4906 = vst [vmem:[#allocation18_spill] sm:$0xff] %v2939_v35 }
  0xc5   : > { %427 = vadd.xlane.f32.xlu2 %v407_v39  ;;  %425 = vadd.xlane.f32.xlu1 %v406_v40  ;;  %v2942_v39 = vld [vmem:[%s2881_s23 + $0x50] sm:$0xff]  ;;  %v463_v40 = vmul.f32 %v2936_v34, %v2936_v34 }
  0xc6   : > { %423 = vadd.xlane.f32.xlu0 %v405_v41  ;;  %4907 = vst [vmem:[#allocation19_spill] sm:$0xff] %v2942_v39  ;;  %v462_v41 = vmul.f32 %v2939_v35, %v2939_v35  ;;  %v502_v35 = vmul.f32 %v2824_v37, %v2765_v7 }
  0xcd   : > { %433 = vadd.xlane.f32.xlu2 %v410_v45  ;;  %431 = vadd.xlane.f32.xlu1 %v409_v46  ;;  %v461_v45 = vmul.f32 %v2942_v39, %v2942_v39  ;;  %v354_v46 = vld [vmem:[%s2881_s23 + $0x78] sm:$0xff] }
  0xce   : > { %429 = vadd.xlane.f32.xlu0 %v408_v47  ;;  %v353_v47 = vld [vmem:[%s2881_s23 + $0x70] sm:$0xff]  ;;  %v466_v61 = vmul.f32 %v354_v46, %v354_v46 }
  0xcf   : > { %v465_v62 = vmul.f32 %v353_v47, %v353_v47 }
  0xd5   : > { %439 = vadd.xlane.f32.xlu2 %v413_v51  ;;  %437 = vadd.xlane.f32.xlu1 %v412_v52  ;;  %v352_v51 = vld [vmem:[%s2881_s23 + $0x68] sm:$0xff] }
  0xd6   : > { %435 = vadd.xlane.f32.xlu0 %v411_v53 }
  0xdd   : > { %445 = vadd.xlane.f32.xlu2 %v416_v57  ;;  %443 = vadd.xlane.f32.xlu1 %v415_v58 }
  0xde   : > { %441 = vadd.xlane.f32.xlu0 %v414_v59 }
  0xe5   : > { %467 = vadd.xlane.f32.xlu2 %v451_v63  ;;  %449 = vadd.xlane.f32.xlu1 %v418_v3  ;;  %v464_v3 = vmul.f32 %v352_v51, %v352_v51 }
  0xe6   : > { %447 = vadd.xlane.f32.xlu0 %v417_v4 }
  0xed   : > { %473 = vadd.xlane.f32.xlu2 %v454_v11  ;;  %471 = vadd.xlane.f32.xlu1 %v453_v15 }
  0xee   : > { %469 = vadd.xlane.f32.xlu0 %v452_v16 }
  0xf5   : > { %479 = vadd.xlane.f32.xlu2 %v457_v23  ;;  %477 = vadd.xlane.f32.xlu1 %v456_v24 }
  0xf6   : > { %475 = vadd.xlane.f32.xlu0 %v455_v25  ;;  %v500_v25 = vmul.f32 %v2810_v30, %v2768_v8 }
  0xfd   : > { %485 = vadd.xlane.f32.xlu2 %v460_v29  ;;  %483 = vadd.xlane.f32.xlu1 %v459_v32  ;;  %v547_v29 = vmul.f32 %v2884_v60, %v2753_v2 }
  0xfe   : > { %481 = vadd.xlane.f32.xlu0 %v458_v33 }
 0x105   : > { %491 = vadd.xlane.f32.xlu2 %v463_v40  ;;  %489 = vadd.xlane.f32.xlu1 %v462_v41  ;;  %v499_v41 = vmul.f32 %v2813_v31, %v2753_v2 }
 0x106   : > { %487 = vadd.xlane.f32.xlu0 %v461_v45 }
 0x108   : > { %v2953_v52 = vpop.xlane.xlu2 %379  ;;  %v2955_v53 = vpop.xlane.xlu1 %375 }
 0x109   : > { %v2958_v57 = vmax.f32 %v2953_v52, 1e-24  ;;  %v2961_v58 = vmax.f32 %v2955_v53, 1e-24  ;;  %v2963_v59 = vpop.xlane.xlu0 %371 }
 0x10a   : > { %v2966_v63 = vmax.f32 %v2963_v59, 1e-24 }
 0x10b   : > { %2133 = vrsqrt.f32 %v2958_v57  ;;  %vm657_vm0 = vweird.f32 %v2958_v57  ;;  %vm637_vm2 = vweird.f32 %v2961_v58 }
 0x10c   : > { %2135 = vrsqrt.f32 %v2961_v58  ;;  %vm617_vm3 = vweird.f32 %v2966_v63 }
 0x10d   : > { %2137 = vrsqrt.f32 %v2966_v63  ;;  %497 = vadd.xlane.f32.xlu2 %v466_v61  ;;  %495 = vadd.xlane.f32.xlu1 %v465_v62 }
 0x10e   : > { %493 = vadd.xlane.f32.xlu0 %v464_v3  ;;  %v501_v3 = vmul.f32 %v2827_v38, %v2750_v1 }
 0x110   : > { %v2971_v4 = vpop.xlane.xlu2 %381  ;;  %v2973_v11 = vpop.xlane.xlu1 %377 }
 0x111   : > { %v2975_v15 = vpop.eup %2133  ;;  %v2978_v16 = vmax.f32 %v2971_v4, 1e-24  ;;  %v2981_v23 = vmax.f32 %v2973_v11, 1e-24  ;;  %v2983_v24 = vpop.xlane.xlu0 %373 }
 0x112   : > { %v2989_v32 = vpop.eup %2135  ;;  %v652_v33 = vmul.f32 %v2975_v15, %v2958_v57  ;;  %v2994_v40 = vmax.f32 %v2983_v24, 1e-24  ;;  %vm658_vm1 = vweird.f32 %v2975_v15 }
 0x113   : > { %v2998_v45 = vpop.eup %2137  ;;  %v632_v46 = vmul.f32 %v2989_v32, %v2961_v58  ;;  %2139 = vrsqrt.f32 %v2978_v16  ;;  %vm659_vm4 = vmor %vm657_vm0, %vm658_vm1  ;;  %vm638_vm5 = vweird.f32 %v2989_v32  ;;  %vm667_vm8 = vweird.f32 %v2978_v16 }
 0x114   : > { %v653_v30 = vmul.f32 %v2975_v15, %v652_v33  ;;  %v612_v60 = vmul.f32 %v2998_v45, %v2966_v63  ;;  %2141 = vrsqrt.f32 %v2981_v23  ;;  %vm618_vm6 = vweird.f32 %v2998_v45  ;;  %vm639_vm7 = vmor %vm637_vm2, %vm638_vm5 }
 0x115   : > { %v633_v47 = vmul.f32 %v2989_v32, %v632_v46  ;;  %2143 = vrsqrt.f32 %v2994_v40  ;;  %517 = vadd.xlane.f32.xlu1 %v500_v25  ;;  %563 = vadd.xlane.f32.xlu2 %v547_v29  ;;  %v549_v29 = vmul.f32 %v2894_v9, %v2750_v1  ;;  %vm619_vm9 = vmor %vm617_vm3, %vm618_vm6  ;;  %vm647_vm12 = vweird.f32 %v2981_v23 }
 0x116   : > { %v654_v2 = vmul.f32 0.5, %v653_v30  ;;  %v613_v31 = vmul.f32 %v2998_v45, %v612_v60  ;;  %515 = vadd.xlane.f32.xlu0 %v499_v41  ;;  %v548_v30 = vmul.f32 %v2897_v10, %v2768_v8  ;;  %vm627_vm14 = vweird.f32 %v2994_v40 }
 0x117   : > { %v634_v51 = vmul.f32 0.5, %v633_v47 }
 0x118   : > { %v3010_v61 = vpop.xlane.xlu2 %387  ;;  %v3012_v62 = vpop.xlane.xlu1 %385  ;;  %v655_v55 = vsub.f32 1.5, %v654_v2  ;;  %v614_v46 = vmul.f32 0.5, %v613_v31 }
 0x119   : > { %v3016_v33 = vpop.eup %2139  ;;  %v3019_v54 = vmax.f32 %v3010_v61, 1e-24  ;;  %v3021_v25 = vpop.xlane.xlu0 %383  ;;  %v635_v47 = vsub.f32 1.5, %v634_v51  ;;  %v3036_v2 = vmax.f32 %v3012_v62, 1e-24  ;;  %v503_v51 = vmul.f32 %v2821_v36, %v2747_v0 }
 0x11a   : > { %v3025_v41 = vpop.eup %2141  ;;  %v662_v38 = vmul.f32 %v3016_v33, %v2978_v16  ;;  %v656_v1 = vmul.f32 %v2975_v15, %v655_v55  ;;  %v615_v9 = vsub.f32 1.5, %v614_v46  ;;  %v550_v55 = vmul.f32 %v2891_v5, %v2765_v7 }
 0x11b   : > { %v3029_v60 = vpop.eup %2143  ;;  %2145 = vrsqrt.f32 %v3019_v54  ;;  %v642_v8 = vmul.f32 %v3025_v41, %v2981_v23  ;;  %vm668_vm10 = vweird.f32 %v3016_v33  ;;  %vm648_vm11 = vweird.f32 %v3025_v41 }
 0x11c   : > { %v622_v10 = vmul.f32 %v3029_v60, %v2994_v40  ;;  %v663_v31 = vmul.f32 %v3016_v33, %v662_v38  ;;  %2147 = vrsqrt.f32 %v3036_v2  ;;  %v3064_v5 = vsel %vm659_vm4, %v2975_v15, %v656_v1  ;;  %vm669_vm2 = vmor %vm667_vm8, %vm668_vm10 }
 0x11d   : > { %519 = vadd.xlane.f32.xlu1 %v501_v3  ;;  %567 = vadd.xlane.f32.xlu2 %v549_v29  ;;  %v636_v3 = vmul.f32 %v2989_v32, %v635_v47  ;;  %4908 = vst [vmem:[#allocation20_spill] sm:$0xff] %v3064_v5  ;;  %v616_v36 = vmul.f32 %v2998_v45, %v615_v9  ;;  %v3069_v38 = vmax.f32 %v3021_v25, 1e-24  ;;  %vm628_vm13 = vweird.f32 %v3029_v60  ;;  %vm649_vm4 = vmor %vm647_vm12, %vm648_vm11 }
 0x11e   : > { %565 = vadd.xlane.f32.xlu0 %v548_v30  ;;  %v643_v57 = vmul.f32 %v3025_v41, %v642_v8  ;;  %v623_v34 = vmul.f32 %v3029_v60, %v622_v10  ;;  %v504_v15 = vmul.f32 %v2842_v44, %v2762_v6  ;;  %v664_v1 = vmul.f32 0.5, %v663_v31  ;;  %vm629_vm5 = vmor %vm627_vm14, %vm628_vm13 }
 0x11f   : > { %2149 = vrsqrt.f32 %v3069_v38  ;;  %v552_v8 = vmul.f32 %v2909_v21, %v2762_v6  ;;  %v1127_v7 = vmul.f32 %v3064_v5, %v2953_v52  ;;  %v3094_v37 = vsel %vm639_vm7, %v2989_v32, %v636_v3 }
 0x120   : > { %v3057_v46 = vpop.xlane.xlu2 %393  ;;  %v3059_v29 = vpop.xlane.xlu1 %391  ;;  %4909 = vst [vmem:[#allocation21_spill] sm:$0xff] %v3094_v37  ;;  %v3105_v10 = vsel %vm619_vm9, %v2998_v45, %v616_v36  ;;  %v644_v6 = vmul.f32 0.5, %v643_v57  ;;  %v551_v21 = vmul.f32 %v2912_v22, %v2747_v0  ;;  %v1125_v63 = vmul.f32 %v3094_v37, %v2955_v53 }
 0x121   : > { %v3061_v30 = vpop.eup %2145  ;;  %v3071_v47 = vpop.xlane.xlu0 %389  ;;  %v3087_v9 = vmax.f32 %v3057_v46, 1e-24  ;;  %v3102_v58 = vmax.f32 %v3059_v29, 1e-24  ;;  %v665_v32 = vsub.f32 1.5, %v664_v1  ;;  %v3122_v22 = vmul.f32 %v1127_v7, %v3064_v5 }
 0x122   : > { %v692_v39 = vmul.f32 %v3061_v30, %v3019_v54  ;;  %v3110_v52 = vpop.eup %2147  ;;  %v3128_v45 = vmax.f32 %v3071_v47, 1e-24  ;;  %vm697_vm15 = vweird.f32 %v3019_v54  ;;  %vm698_vm0 = vweird.f32 %v3061_v30 }
 0x123   : > { %2151 = vrsqrt.f32 %v3087_v9  ;;  %v682_v0 = vmul.f32 %v3110_v52, %v3036_v2  ;;  %vm687_vm1 = vweird.f32 %v3036_v2  ;;  %vm677_vm3 = vweird.f32 %v3069_v38  ;;  %vm699_vm6 = vmor %vm697_vm15, %vm698_vm0 }
 0x124   : > { %v693_v44 = vmul.f32 %v3061_v30, %v692_v39  ;;  %v624_v39 = vmul.f32 0.5, %v623_v34  ;;  %2153 = vrsqrt.f32 %v3102_v58  ;;  %v1123_v34 = vmul.f32 %v3105_v10, %v2963_v59 }
 0x125   : > { %569 = vadd.xlane.f32.xlu1 %v550_v55  ;;  %523 = vadd.xlane.f32.xlu2 %v503_v51  ;;  %v3134_v55 = vpop.eup %2149  ;;  %v645_v51 = vsub.f32 1.5, %v644_v6  ;;  %v683_v3 = vmul.f32 %v3110_v52, %v682_v0  ;;  %2155 = vrsqrt.f32 %v3128_v45  ;;  %v3152_v6 = vmul.f32 %v1125_v63, %v3094_v37 }
 0x126   : > { %521 = vadd.xlane.f32.xlu0 %v502_v35  ;;  %v694_v35 = vmul.f32 0.5, %v693_v44  ;;  %v625_v57 = vsub.f32 1.5, %v624_v39  ;;  %v672_v1 = vmul.f32 %v3134_v55, %v3069_v38  ;;  %v666_v0 = vmul.f32 %v3016_v33, %v665_v32 }
 0x127   : > { %v684_v5 = vmul.f32 0.5, %v683_v3  ;;  %v3159_v39 = vmul.f32 %v1123_v34, %v3105_v10  ;;  %v646_v49 = vmul.f32 %v3025_v41, %v645_v51  ;;  %vm688_vm7 = vweird.f32 %v3110_v52 }
 0x128   : > { %v3130_v53 = vpop.xlane.xlu2 %399  ;;  %v3132_v31 = vpop.xlane.xlu1 %397  ;;  %v695_v56 = vsub.f32 1.5, %v694_v35  ;;  %v673_v18 = vmul.f32 %v3134_v55, %v672_v1  ;;  %v626_v32 = vmul.f32 %v3029_v60, %v625_v57  ;;  %v3177_v51 = vsel %vm669_vm2, %v3016_v33, %v666_v0  ;;  %vm689_vm9 = vmor %vm687_vm1, %vm688_vm7 }
 0x129   : > { %4910 = vst [vmem:[#allocation22_spill] sm:$0xff] %v3130_v53  ;;  %v3139_v36 = vmax.f32 %v3130_v53, 1e-24  ;;  %v3141_v59 = vpop.xlane.xlu0 %395  ;;  %v3147_v7 = vmax.f32 %v3132_v31, 1e-24  ;;  %v3149_v44 = vpop.eup %2151  ;;  %v685_v3 = vsub.f32 1.5, %v684_v5  ;;  %v553_v1 = vmul.f32 %v2906_v17, %v2783_v14 }
 0x12a   : > { %4911 = vst [vmem:[#allocation23_spill] sm:$0xff] %v3132_v31  ;;  %v3156_v53 = vpop.eup %2153  ;;  %v722_v31 = vmul.f32 %v3149_v44, %v3087_v9  ;;  %v674_v34 = vmul.f32 0.5, %v673_v18  ;;  %v696_v18 = vmul.f32 %v3061_v30, %v695_v56  ;;  %v506_v0 = vmul.f32 %v2836_v42, %v2780_v13 }
 0x12b   : > { %2157 = vrsqrt.f32 %v3139_v36  ;;  %v712_v63 = vmul.f32 %v3156_v53, %v3102_v58  ;;  %4912 = vst [vmem:[#allocation24_spill] sm:$0xff] %v3177_v51  ;;  %v686_v42 = vmul.f32 %v3110_v52, %v685_v3  ;;  %vm678_vm8 = vweird.f32 %v3134_v55 }
 0x12c   : > { %v723_v35 = vmul.f32 %v3149_v44, %v722_v31  ;;  %2159 = vrsqrt.f32 %v3147_v7  ;;  %v675_v16 = vsub.f32 1.5, %v674_v34  ;;  %v3210_v34 = vsel %vm649_vm4, %v3025_v41, %v646_v49  ;;  %vm679_vm11 = vmor %vm677_vm3, %vm678_vm8 }
 0x12d   : > { %525 = vadd.xlane.f32.xlu1 %v504_v15  ;;  %573 = vadd.xlane.f32.xlu2 %v552_v8  ;;  %v713_v15 = vmul.f32 %v3156_v53, %v712_v63  ;;  %v3181_v8 = vpop.eup %2155  ;;  %v1128_v63 = vmul.f32 %v3177_v51, %v2971_v4  ;;  %4913 = vst [vmem:[#allocation25_spill] sm:$0xff] %v3210_v34  ;;  %vm727_vm10 = vweird.f32 %v3087_v9  ;;  %vm728_vm12 = vweird.f32 %v3149_v44 }
 0x12e   : > { %571 = vadd.xlane.f32.xlu0 %v551_v21  ;;  %v724_v31 = vmul.f32 0.5, %v723_v35  ;;  %v3189_v21 = vmax.f32 %v3141_v59, 1e-24  ;;  %v702_v56 = vmul.f32 %v3181_v8, %v3128_v45  ;;  %v3213_v35 = vsel %vm629_vm5, %v3029_v60, %v626_v32  ;;  %vm729_vm15 = vmor %vm727_vm10, %vm728_vm12 }
 0x12f   : > { %v714_v23 = vmul.f32 0.5, %v713_v15  ;;  %v3230_v4 = vsel %vm699_vm6, %v3061_v30, %v696_v18  ;;  %v676_v41 = vmul.f32 %v3134_v55, %v675_v16  ;;  %v1126_v30 = vmul.f32 %v3210_v34, %v2973_v11 }
 0x130   : > { %v3191_v33 = vpop.xlane.xlu2 %421  ;;  %v3193_v5 = vpop.xlane.xlu1 %419  ;;  %v703_v49 = vmul.f32 %v3181_v8, %v702_v56  ;;  %4915 = vst [vmem:[#allocation27_spill] sm:$0xff] %v3230_v4  ;;  %v725_v60 = vsub.f32 1.5, %v724_v31  ;;  %2161 = vrsqrt.f32 %v3189_v21  ;;  %v3238_v56 = vmul.f32 %v1128_v63, %v3177_v51 }
 0x131   : > { %v3195_v57 = vpop.eup %2157  ;;  %v3217_v15 = vpop.xlane.xlu0 %401  ;;  %v715_v32 = vsub.f32 1.5, %v714_v23  ;;  %v1124_v18 = vmul.f32 %v3213_v35, %v2983_v24  ;;  %v1131_v16 = vmul.f32 %v3230_v4, %v3010_v61  ;;  %v3252_v31 = vsel %vm689_vm9, %v3110_v52, %v686_v42 }
 0x132   : > { %v752_v40 = vmul.f32 %v3195_v57, %v3139_v36  ;;  %4914 = vst [vmem:[#allocation26_spill] sm:$0xff] %v3217_v15  ;;  %v3227_v17 = vpop.eup %2159  ;;  %v704_v37 = vmul.f32 0.5, %v703_v49  ;;  %v3260_v24 = vsel %vm679_vm11, %v3134_v55, %v676_v41  ;;  %vm718_vm13 = vweird.f32 %v3156_v53 }
 0x133   : > { %v742_v3 = vmul.f32 %v3227_v17, %v3147_v7  ;;  %4916 = vst [vmem:[#allocation28_spill] sm:$0xff] %v3252_v31  ;;  %v3265_v61 = vmax.f32 %v3191_v33, 1e-24  ;;  %v726_v38 = vmul.f32 %v3149_v44, %v725_v60  ;;  %v3277_v55 = vmul.f32 %v1126_v30, %v3210_v34 }
 0x134   : > { %v753_v54 = vmul.f32 %v3195_v57, %v752_v40  ;;  %v705_v11 = vsub.f32 1.5, %v704_v37  ;;  %4917 = vst [vmem:[#allocation29_spill] sm:$0xff] %v3260_v24  ;;  %v3274_v37 = vmax.f32 %v3193_v5, 1e-24  ;;  %v1130_v63 = vmul.f32 %v3252_v31, %v3012_v62 }
 0x135   : > { %575 = vadd.xlane.f32.xlu1 %v553_v1  ;;  %529 = vadd.xlane.f32.xlu2 %v506_v0  ;;  %v743_v2 = vmul.f32 %v3227_v17, %v742_v3  ;;  %v716_v1 = vmul.f32 %v3156_v53, %v715_v32  ;;  %vm708_vm14 = vweird.f32 %v3181_v8  ;;  %v3286_v49 = vmul.f32 %v1124_v18, %v3213_v35 }
 0x136   : > { %v754_v0 = vmul.f32 0.5, %v753_v54  ;;  %v706_v40 = vmul.f32 %v3181_v8, %v705_v11  ;;  %v3283_v42 = vpop.eup %2161  ;;  %vm717_vm0 = vweird.f32 %v3102_v58  ;;  %2163 = vrsqrt.f32 %v3265_v61 }
 0x137   : > { %v744_v41 = vmul.f32 0.5, %v743_v2  ;;  %v3295_v62 = vmul.f32 %v1131_v16, %v3230_v4  ;;  %v1129_v60 = vmul.f32 %v3260_v24, %v3021_v25  ;;  %vm719_vm1 = vmor %vm717_vm0, %vm718_vm13  ;;  %vm707_vm2 = vweird.f32 %v3128_v45 }
 0x138   : > { %v3267_v52 = vpop.xlane.xlu2 %427  ;;  %v3269_v23 = vpop.xlane.xlu1 %425  ;;  %vm757_vm3 = vweird.f32 %v3139_v36  ;;  %v3306_v58 = vsel %vm729_vm15, %v3149_v44, %v726_v38  ;;  %v3309_v32 = vsel %vm719_vm1, %v3156_v53, %v716_v1  ;;  %vm709_vm4 = vmor %vm707_vm2, %vm708_vm14  ;;  %v755_v54 = vsub.f32 1.5, %v754_v0 }
 0x139   : > { %v3303_v9 = vpop.xlane.xlu0 %423  ;;  %4918 = vst [vmem:[#allocation30_spill] sm:$0xff] %v3306_v58  ;;  %vm747_vm5 = vweird.f32 %v3147_v7  ;;  %2165 = vrsqrt.f32 %v3274_v37  ;;  %v3316_v25 = vmul.f32 %v1130_v63, %v3252_v31  ;;  %v3319_v45 = vsel %vm709_vm4, %v3181_v8, %v706_v40 }
 0x13a   : > { %4919 = vst [vmem:[#allocation31_spill] sm:$0xff] %v3309_v32  ;;  %vm758_vm6 = vweird.f32 %v3195_v57  ;;  %v732_v53 = vmul.f32 %v3283_v42, %v3189_v21  ;;  %v745_v44 = vsub.f32 1.5, %v744_v41  ;;  %v505_v3 = vmul.f32 %v2839_v43, %v2783_v14 }
 0x13b   : > { %4920 = vst [vmem:[#allocation32_spill] sm:$0xff] %v3316_v25  ;;  %v3327_v30 = vmax.f32 %v3267_v52, 1e-24  ;;  %v3330_v18 = vmax.f32 %v3269_v23, 1e-24  ;;  %v1134_v16 = vmul.f32 %v3306_v58, %v3057_v46  ;;  %v1133_v8 = vmul.f32 %v3309_v32, %v3059_v29  ;;  %vm759_vm8 = vmor %vm757_vm3, %vm758_vm6 }
 0x13c   : > { %4921 = vst [vmem:[#allocation33_spill] sm:$0xff] %v3319_v45  ;;  %v3337_v11 = vmax.f32 %v3303_v9, 1e-24  ;;  %v507_v2 = vmul.f32 %v2857_v50, %v2777_v12  ;;  %v2164_v43 = vpop.eup %2163  ;;  %v3346_v1 = vmul.f32 %v1129_v60, %v3260_v24  ;;  %v756_v0 = vmul.f32 %v3195_v57, %v755_v54  ;;  %527 = vadd.xlane.f32.xlu0 %v505_v3 }
 0x13d   : > { %vm748_vm7 = vweird.f32 %v3227_v17  ;;  %2167 = vrsqrt.f32 %v3327_v30  ;;  %v1132_v46 = vmul.f32 %v3319_v45, %v3071_v47  ;;  %v798_v50 = vmul.f32 %v2164_v43, %v3265_v61 }
 0x13e   : > { %v3355_v29 = vmax.f32 %v3217_v15, 1e-24  ;;  %2169 = vrsqrt.f32 %v3330_v18  ;;  %531 = vadd.xlane.f32.xlu1 %v507_v2  ;;  %v746_v40 = vmul.f32 %v3227_v17, %v745_v44  ;;  %v733_v41 = vmul.f32 %v3283_v42, %v732_v53  ;;  %vm749_vm11 = vmor %vm747_vm5, %vm748_vm7 }
 0x13f   : > { %v2166_v63 = vpop.eup %2165  ;;  %2171 = vrsqrt.f32 %v3337_v11  ;;  %v555_v60 = vmul.f32 %v2924_v27, %v2777_v12  ;;  %v3364_v47 = vmul.f32 %v1134_v16, %v3306_v58  ;;  %v3367_v54 = vmul.f32 %v1133_v8, %v3309_v32 }
 0x140   : > { %v3341_v38 = vpop.xlane.xlu2 %433  ;;  %v3343_v14 = vpop.xlane.xlu1 %431  ;;  %v799_v3 = vmul.f32 %v2164_v43, %v798_v50  ;;  %v788_v44 = vmul.f32 %v2166_v63, %v3274_v37  ;;  %v3375_v53 = vsel %vm759_vm8, %v3195_v57, %v756_v0  ;;  %vm803_vm9 = vweird.f32 %v3265_v61 }
 0x141   : > { %4922 = vst [vmem:[#allocation34_spill] sm:$0xff] %v3375_v53  ;;  %vm793_vm10 = vweird.f32 %v3274_v37  ;;  %579 = vadd.xlane.f32.xlu2 %v555_v60  ;;  %v554_v12 = vmul.f32 %v2927_v28, %v2780_v13  ;;  %v3382_v27 = vmul.f32 %v1132_v46, %v3319_v45  ;;  %v3389_v57 = vmax.f32 %v3341_v38, 1e-24  ;;  %v3391_v8 = vpop.xlane.xlu0 %429 }
 0x142   : > { %v800_v36 = vmul.f32 0.5, %v799_v3  ;;  %v789_v16 = vmul.f32 %v2166_v63, %v788_v44  ;;  %v3394_v0 = vsel %vm749_vm11, %v3227_v17, %v746_v40  ;;  %v734_v13 = vmul.f32 0.5, %v733_v41 }
 0x143   : > { %v2168_v2 = vpop.eup %2167  ;;  %4923 = vst [vmem:[#allocation35_spill] sm:$0xff] %v3394_v0  ;;  %2173 = vrsqrt.f32 %v3355_v29  ;;  %v556_v28 = vmul.f32 %v2921_v26, %v2798_v20  ;;  %vm804_vm12 = vweird.f32 %v2164_v43  ;;  %vm794_vm13 = vweird.f32 %v2166_v63 }
 0x144   : > { %v3399_v46 = vpop.eup %2169  ;;  %v801_v7 = vsub.f32 1.5, %v800_v36  ;;  %v790_v50 = vmul.f32 0.5, %v789_v16  ;;  %v828_v60 = vmul.f32 %v2168_v2, %v3327_v30  ;;  %577 = vadd.xlane.f32.xlu0 %v554_v12  ;;  %2175 = vrsqrt.f32 %v3389_v57  ;;  %vm805_vm14 = vmor %vm803_vm9, %vm804_vm12 }
 0x145   : > { %v2172_v44 = vpop.eup %2171  ;;  %v818_v17 = vmul.f32 %v3399_v46, %v3330_v18  ;;  %v3408_v40 = vmax.f32 %v3343_v14, 1e-24  ;;  %v735_v58 = vsub.f32 1.5, %v734_v13  ;;  %vm833_vm15 = vweird.f32 %v3327_v30  ;;  %vm795_vm1 = vmor %vm793_vm10, %vm794_vm13 }
 0x146   : > { %v802_v26 = vmul.f32 %v2164_v43, %v801_v7  ;;  %v791_v41 = vsub.f32 1.5, %v790_v50  ;;  %v829_v36 = vmul.f32 %v2168_v2, %v828_v60  ;;  %v808_v16 = vmul.f32 %v2172_v44, %v3337_v11  ;;  %581 = vadd.xlane.f32.xlu1 %v556_v28 }
 0x147   : > { %v819_v12 = vmul.f32 %v3399_v46, %v818_v17  ;;  %vm823_vm0 = vweird.f32 %v3330_v18  ;;  %2177 = vrsqrt.f32 %v3408_v40  ;;  %v3430_v28 = vmax.f32 %v3391_v8, 1e-24 }
 0x148   : > { %v3402_v3 = vpop.xlane.xlu1 %437  ;;  %v3411_v15 = vpop.xlane.xlu2 %439  ;;  %v3419_v45 = vsel %vm805_vm14, %v2164_v43, %v802_v26  ;;  %v792_v7 = vmul.f32 %v2166_v63, %v791_v41  ;;  %v830_v50 = vmul.f32 0.5, %v829_v36  ;;  %v809_v60 = vmul.f32 %v2172_v44, %v808_v16 }
 0x149   : > { %v3421_v32 = vpop.eup %2173  ;;  %v1156_v13 = vmul.f32 %v3419_v45, %v3191_v33  ;;  %v820_v61 = vmul.f32 0.5, %v819_v12  ;;  %vm834_vm2 = vweird.f32 %v2168_v2  ;;  %vm738_vm3 = vweird.f32 %v3283_v42 }
 0x14a   : > { %v3432_v43 = vsel %vm795_vm1, %v2166_v63, %v792_v7  ;;  %v831_v17 = vsub.f32 1.5, %v830_v50  ;;  %v810_v26 = vmul.f32 0.5, %v809_v60  ;;  %v2176_v41 = vpop.eup %2175  ;;  %vm824_vm4 = vweird.f32 %v3399_v46  ;;  %v3440_v7 = vpop.xlane.xlu0 %435  ;;  %vm835_vm7 = vmor %vm833_vm15, %vm834_vm2 }
 0x14b   : > { %v1172_v33 = vmul.f32 %v1156_v13, %v3419_v45  ;;  %v1155_v37 = vmul.f32 %v3432_v43, %v3193_v5  ;;  %v821_v36 = vsub.f32 1.5, %v820_v61  ;;  %vm814_vm5 = vweird.f32 %v2172_v44  ;;  %vm825_vm8 = vmor %vm823_vm0, %vm824_vm4 }
 0x14c   : > { %v832_v16 = vmul.f32 %v2168_v2, %v831_v17  ;;  %v811_v12 = vsub.f32 1.5, %v810_v26  ;;  %v858_v63 = vmul.f32 %v2176_v41, %v3389_v57  ;;  %v736_v60 = vmul.f32 %v3283_v42, %v735_v58 }
 0x14d   : > { %vm737_vm6 = vweird.f32 %v3189_v21  ;;  %v3447_v13 = vadd.f32 %v1172_v33, %v3286_v49  ;;  %v1171_v5 = vmul.f32 %v1155_v37, %v3432_v43  ;;  %v822_v61 = vmul.f32 %v3399_v46, %v821_v36  ;;  %v2178_v4 = vpop.eup %2177 }
 0x14e   : > { %v3454_v17 = vsel %vm835_vm7, %v2168_v2, %v832_v16  ;;  %v812_v26 = vmul.f32 %v2172_v44, %v811_v12  ;;  %vm813_vm9 = vweird.f32 %v3337_v11  ;;  %v859_v58 = vmul.f32 %v2176_v41, %v858_v63  ;;  %vm739_vm14 = vmor %vm737_vm6, %vm738_vm3 }
 0x14f   : > { %4924 = vst [vmem:[#allocation36_spill] sm:$0xff] %v3447_v13  ;;  %v3460_v33 = vadd.f32 %v1171_v5, %v3159_v39  ;;  %v1159_v37 = vmul.f32 %v3454_v17, %v3267_v52  ;;  %v3465_v30 = vsel %vm825_vm8, %v3399_v46, %v822_v61  ;;  %vm815_vm10 = vmor %vm813_vm9, %vm814_vm5  ;;  %2179 = vrsqrt.f32 %v3430_v28 }
 0x150   : > { %v3442_v50 = vpop.xlane.xlu1 %443  ;;  %4925 = vst [vmem:[#allocation37_spill] sm:$0xff] %v3454_v17  ;;  %v1158_v18 = vmul.f32 %v3465_v30, %v3269_v23  ;;  %v3471_v2 = vsel %vm815_vm10, %v2172_v44, %v812_v26  ;;  %v860_v11 = vmul.f32 0.5, %v859_v58  ;;  %v848_v36 = vmul.f32 %v2178_v4, %v3408_v40  ;;  %v3474_v16 = vpop.xlane.xlu2 %445  ;;  %v4929_v26 = vld [vmem:[#allocation13_spill] sm:$0xff] }
 0x151   : > { %4926 = vst [vmem:[#allocation38_spill] sm:$0xff] %v3460_v33  ;;  %v1175_v12 = vmul.f32 %v1159_v37, %v3454_v17  ;;  %v1157_v52 = vmul.f32 %v3471_v2, %v3303_v9  ;;  %vm863_vm11 = vweird.f32 %v3389_v57  ;;  %vm864_vm12 = vweird.f32 %v2176_v41 }
 0x152   : > { %4927 = vst [vmem:[#allocation39_spill] sm:$0xff] %v3465_v30  ;;  %v1174_v46 = vmul.f32 %v1158_v18, %v3465_v30  ;;  %v861_v63 = vsub.f32 1.5, %v860_v11  ;;  %v849_v5 = vmul.f32 %v2178_v4, %v848_v36  ;;  %v509_v23 = vmul.f32 %v2851_v48, %v2795_v19  ;;  %vm865_vm13 = vmor %vm863_vm11, %vm864_vm12  ;;  %v3522_v57 = vpop.xlane.xlu0 %441 }
 0x153   : > { %v3484_v44 = vadd.f32 %v1175_v12, %v3122_v22  ;;  %v1173_v61 = vmul.f32 %v1157_v52, %v3471_v2  ;;  %v508_v58 = vmul.f32 %v4929_v26, %v2798_v20  ;;  %v3490_v9 = vmax.f32 %v3411_v15, 1e-24  ;;  %v4931_v12 = vld [vmem:[#allocation23_spill] sm:$0xff] }
 0x154   : > { %v3493_v37 = vadd.f32 %v1174_v46, %v3277_v55  ;;  %v862_v18 = vmul.f32 %v2176_v41, %v861_v63  ;;  %v850_v11 = vmul.f32 0.5, %v849_v5  ;;  %535 = vadd.xlane.f32.xlu2 %v509_v23  ;;  %v3496_v36 = vmax.f32 %v3402_v3, 1e-24 }
 0x155   : > { %4928 = vst [vmem:[#allocation40_spill] sm:$0xff] %v3484_v44  ;;  %v3498_v48 = vpop.eup %2179  ;;  %v3502_v52 = vmul.f32 %v3394_v0, %v4931_v12  ;;  %v3505_v20 = vadd.f32 %v1173_v61, %v3152_v6  ;;  %533 = vadd.xlane.f32.xlu0 %v508_v58  ;;  %2181 = vrsqrt.f32 %v3490_v9  ;;  %v3512_v46 = vmax.f32 %v3440_v7, 1e-24 }
 0x156   : > { %4930 = vst [vmem:[#allocation13_spill] sm:$0xff] %v3493_v37  ;;  %v3518_v63 = vsel %vm865_vm13, %v2176_v41, %v862_v18  ;;  %v851_v5 = vsub.f32 1.5, %v850_v11  ;;  %vm854_vm15 = vweird.f32 %v2178_v4  ;;  %v838_v23 = vmul.f32 %v3498_v48, %v3430_v28  ;;  %v4935_v18 = vld [vmem:[#allocation12_spill] sm:$0xff] }
 0x157   : > { %4932 = vst [vmem:[#allocation23_spill] sm:$0xff] %v3505_v20  ;;  %v3527_v26 = vsel %vm739_vm14, %v3283_v42, %v736_v60  ;;  %v1162_v58 = vmul.f32 %v3518_v63, %v3341_v38  ;;  %vm853_vm0 = vweird.f32 %v3408_v40  ;;  %2183 = vrsqrt.f32 %v3496_v36  ;;  %v4936_v11 = vld [vmem:[#allocation16_spill] sm:$0xff]  ;;  %v4937_v42 = vld [vmem:[#allocation18_spill] sm:$0xff]  ;;  %v4938_v38 = vld [vmem:[#allocation19_spill] sm:$0xff] }
 0x158   : > { %4933 = vst [vmem:[#allocation41_spill] sm:$0xff] %v3518_v63  ;;  %v3524_v61 = vpop.xlane.xlu1 %449  ;;  %v852_v21 = vmul.f32 %v2178_v4, %v851_v5  ;;  %v839_v41 = vmul.f32 %v3498_v48, %v838_v23  ;;  %2185 = vrsqrt.f32 %v3512_v46  ;;  %v510_v12 = vmul.f32 %v4936_v11, %v4935_v18  ;;  %vm855_vm1 = vmor %vm853_vm0, %vm854_vm15 }
 0x159   : > { %4934 = vst [vmem:[#allocation42_spill] sm:$0xff] %v3527_v26  ;;  %v1178_v37 = vmul.f32 %v1162_v58, %v3518_v63  ;;  %v558_v60 = vmul.f32 %v4937_v42, %v4935_v18  ;;  %v557_v44 = vmul.f32 %v4938_v38, %v2795_v19  ;;  %v3543_v40 = vmax.f32 %v3474_v16, 1e-24  ;;  %v3553_v58 = vpop.xlane.xlu2 %467  ;;  %v2293_v38 = vld [vmem:[%s2732_s5 + $0x60] sm:$0xff] }
 0x15a   : > { %v3545_v5 = vsel %vm855_vm1, %v2178_v4, %v852_v21  ;;  %v840_v23 = vmul.f32 0.5, %v839_v41  ;;  %537 = vadd.xlane.f32.xlu1 %v510_v12  ;;  %v3548_v20 = vmax.f32 %v3442_v50, 1e-24  ;;  %v3551_v11 = vmax.f32 %v3522_v57, 1e-24  ;;  %v3606_v24 = vpop.xlane.xlu0 %447 }
 0x15b   : > { %4939 = vst [vmem:[#allocation12_spill] sm:$0xff] %v3545_v5  ;;  %v3555_v33 = vpop.eup %2181  ;;  %v3559_v19 = vmul.f32 %v3527_v26, %v3141_v59  ;;  %v3562_v18 = vadd.f32 %v1178_v37, %v3316_v25  ;;  %v1161_v4 = vmul.f32 %v3545_v5, %v3343_v14  ;;  %2187 = vrsqrt.f32 %v3543_v40 }
 0x15c   : > { %v841_v21 = vsub.f32 1.5, %v840_v23  ;;  %vm844_vm2 = vweird.f32 %v3498_v48  ;;  %v888_v41 = vmul.f32 %v3555_v33, %v3490_v9  ;;  %585 = vadd.xlane.f32.xlu2 %v558_v60  ;;  %2189 = vrsqrt.f32 %v3548_v20  ;;  %v4942_v23 = vld [vmem:[#allocation17_spill] sm:$0xff] }
 0x15d   : > { %4940 = vst [vmem:[#allocation16_spill] sm:$0xff] %v3562_v18  ;;  %v3571_v12 = vpop.eup %2183  ;;  %v1177_v59 = vmul.f32 %v1161_v4, %v3545_v5  ;;  %vm843_vm3 = vweird.f32 %v3430_v28  ;;  %vm893_vm4 = vweird.f32 %v3490_v9  ;;  %583 = vadd.xlane.f32.xlu0 %v557_v44  ;;  %2191 = vrsqrt.f32 %v3551_v11  ;;  %v4944_v18 = vld [vmem:[#allocation14_spill] sm:$0xff] }
 0x15e   : > { %v3577_v14 = vpop.eup %2185  ;;  %v842_v37 = vmul.f32 %v3498_v48, %v841_v21  ;;  %v889_v42 = vmul.f32 %v3555_v33, %v888_v41  ;;  %vm894_vm5 = vweird.f32 %v3555_v33  ;;  %v878_v60 = vmul.f32 %v3571_v12, %v3496_v36  ;;  %vm845_vm7 = vmor %vm843_vm3, %vm844_vm2 }
 0x15f   : > { %vm883_vm6 = vweird.f32 %v3496_v36  ;;  %v3586_v28 = vadd.f32 %v1177_v59, %v3346_v1  ;;  %vm884_vm8 = vweird.f32 %v3571_v12  ;;  %v868_v44 = vmul.f32 %v3577_v14, %v3512_v46  ;;  %vm895_vm14 = vmor %vm893_vm4, %vm894_vm5 }
 0x160   : > { %vm873_vm9 = vweird.f32 %v3512_v46  ;;  %v559_v4 = vmul.f32 %v2293_v38, %v4942_v23  ;;  %v3597_v21 = vsel %vm845_vm7, %v3498_v48, %v842_v37  ;;  %v890_v41 = vmul.f32 0.5, %v889_v42  ;;  %v3608_v63 = vpop.xlane.xlu1 %471  ;;  %v4945_v37 = vld [vmem:[#allocation15_spill] sm:$0xff]  ;;  %vm885_vm0 = vmor %vm883_vm6, %vm884_vm8 }
 0x161   : > { %4941 = vst [vmem:[#allocation18_spill] sm:$0xff] %v3586_v28  ;;  %v879_v59 = vmul.f32 %v3571_v12, %v878_v60  ;;  %vm923_vm10 = vweird.f32 %v3543_v40  ;;  %v3602_v28 = vld [vmem:[%s2732_s5 + $0x68] sm:$0xff]  ;;  %v2188_v31 = vpop.eup %2187  ;;  %v1160_v23 = vmul.f32 %v3597_v21, %v3391_v8  ;;  %v869_v48 = vmul.f32 %v3577_v14, %v868_v44 }
 0x162   : > { %4943 = vst [vmem:[#allocation19_spill] sm:$0xff] %v3597_v21  ;;  %v512_v5 = vmul.f32 %v3602_v28, %v4944_v18  ;;  %vm874_vm11 = vweird.f32 %v3577_v14  ;;  %v511_v42 = vmul.f32 %v2293_v38, %v4945_v37  ;;  %v2190_v60 = vpop.eup %2189  ;;  %v891_v51 = vsub.f32 1.5, %v890_v41  ;;  %587 = vadd.xlane.f32.xlu1 %v559_v4  ;;  %v3624_v4 = vpop.xlane.xlu2 %473 }
 0x163   : > { %v880_v13 = vmul.f32 0.5, %v879_v59  ;;  %v918_v25 = vmul.f32 %v2188_v31, %v3543_v40  ;;  %v3617_v18 = vmax.f32 %v3553_v58, 1e-24  ;;  %v2192_v30 = vpop.eup %2191  ;;  %v1176_v34 = vmul.f32 %v1160_v23, %v3597_v21  ;;  %vm875_vm1 = vmor %vm873_vm9, %vm874_vm11 }
 0x164   : > { %v870_v17 = vmul.f32 0.5, %v869_v48  ;;  %vm924_vm12 = vweird.f32 %v2188_v31  ;;  %v908_v8 = vmul.f32 %v2190_v60, %v3548_v20  ;;  %vm913_vm13 = vweird.f32 %v3548_v20  ;;  %541 = vadd.xlane.f32.xlu2 %v512_v5 }
 0x165   : > { %v892_v44 = vmul.f32 %v3555_v33, %v891_v51  ;;  %v881_v38 = vsub.f32 1.5, %v880_v13  ;;  %v919_v41 = vmul.f32 %v2188_v31, %v918_v25  ;;  %v898_v59 = vmul.f32 %v2192_v30, %v3551_v11  ;;  %539 = vadd.xlane.f32.xlu0 %v511_v42  ;;  %vm925_vm3 = vmor %vm923_vm10, %vm924_vm12 }
 0x166   : > { %v3627_v37 = vadd.f32 %v1176_v34, %v3238_v56  ;;  %v871_v23 = vsub.f32 1.5, %v870_v17  ;;  %v909_v48 = vmul.f32 %v2190_v60, %v908_v8  ;;  %vm914_vm15 = vweird.f32 %v2190_v60 }
 0x167   : > { %v3634_v51 = vsel %vm895_vm14, %v3555_v33, %v892_v44  ;;  %v882_v25 = vmul.f32 %v3571_v12, %v881_v38  ;;  %v920_v13 = vmul.f32 0.5, %v919_v41  ;;  %v899_v5 = vmul.f32 %v2192_v30, %v898_v59  ;;  %vm915_vm4 = vmor %vm913_vm13, %vm914_vm15 }
 0x168   : > { %4946 = vst [vmem:[#allocation17_spill] sm:$0xff] %v3627_v37  ;;  %v1165_v34 = vmul.f32 %v3634_v51, %v3411_v15  ;;  %v872_v17 = vmul.f32 %v3577_v14, %v871_v23  ;;  %v910_v9 = vmul.f32 0.5, %v909_v48  ;;  %2193 = vrsqrt.f32 %v3617_v18  ;;  %v3663_v23 = vpop.xlane.xlu0 %469  ;;  %v3665_v48 = vpop.xlane.xlu1 %477 }
 0x169   : > { %4947 = vst [vmem:[#allocation14_spill] sm:$0xff] %v3634_v51  ;;  %v3646_v33 = vsel %vm885_vm0, %v3571_v12, %v882_v25  ;;  %v921_v42 = vsub.f32 1.5, %v920_v13  ;;  %v900_v15 = vmul.f32 0.5, %v899_v5  ;;  %vm904_vm2 = vweird.f32 %v2192_v30 }
 0x16a   : > { %4948 = vst [vmem:[#allocation15_spill] sm:$0xff] %v3646_v33  ;;  %v1181_v8 = vmul.f32 %v1165_v34, %v3634_v51  ;;  %v1164_v36 = vmul.f32 %v3646_v33, %v3402_v3  ;;  %v3656_v44 = vsel %vm875_vm1, %v3577_v14, %v872_v17  ;;  %v911_v38 = vsub.f32 1.5, %v910_v9 }
 0x16b   : > { %4949 = vst [vmem:[#allocation43_spill] sm:$0xff] %v3656_v44  ;;  %v1163_v12 = vmul.f32 %v3656_v44, %v3440_v7  ;;  %v922_v41 = vmul.f32 %v2188_v31, %v921_v42  ;;  %v901_v59 = vsub.f32 1.5, %v900_v15  ;;  %v3661_v46 = vmax.f32 %v3524_v61, 1e-24 }
 0x16c   : > { %v3668_v25 = vadd.f32 %v1181_v8, %v3367_v54  ;;  %v1180_v3 = vmul.f32 %v1164_v36, %v3646_v33  ;;  %v912_v14 = vmul.f32 %v2190_v60, %v911_v38  ;;  %v3675_v7 = vmax.f32 %v3606_v24, 1e-24 }
 0x16d   : > { %v1179_v13 = vmul.f32 %v1163_v12, %v3656_v44  ;;  %v3678_v5 = vsel %vm925_vm3, %v2188_v31, %v922_v41  ;;  %v902_v34 = vmul.f32 %v2192_v30, %v901_v59  ;;  %vm903_vm5 = vweird.f32 %v3551_v11  ;;  %v2295_v12 = vld [vmem:[%s2732_s5 + $0x70] sm:$0xff] }
 0x16e   : > { %4950 = vst [vmem:[#allocation44_spill] sm:$0xff] %v3668_v25  ;;  %v2194_v17 = vpop.eup %2193  ;;  %v3685_v9 = vadd.f32 %v1180_v3, %v3382_v27  ;;  %v1168_v40 = vmul.f32 %v3678_v5, %v3474_v16  ;;  %v3689_v42 = vsel %vm915_vm4, %v2190_v60, %v912_v14  ;;  %vm905_vm6 = vmor %vm903_vm5, %vm904_vm2  ;;  %2195 = vrsqrt.f32 %v3661_v46  ;;  %v3701_v16 = vpop.xlane.xlu2 %479  ;;  %v2296_v41 = vld [vmem:[%s2740_s8 + $0x70] sm:$0xff] }
 0x16f   : > { %4951 = vst [vmem:[#allocation45_spill] sm:$0xff] %v3678_v5  ;;  %v3694_v31 = vadd.f32 %v1179_v13, %v3295_v62  ;;  %v1167_v20 = vmul.f32 %v3689_v42, %v3442_v50  ;;  %v3698_v11 = vsel %vm905_vm6, %v2192_v30, %v902_v34  ;;  %v964_v15 = vmul.f32 %v2194_v17, %v3617_v18  ;;  %v2297_v14 = vld [vmem:[%s2881_s23 + $0x70] sm:$0xff] }
 0x170   : > { %4952 = vst [vmem:[#allocation46_spill] sm:$0xff] %v3685_v9  ;;  %v3705_v60 = vmul.f32 %v3502_v52, %v3394_v0  ;;  %v1184_v8 = vmul.f32 %v1168_v40, %v3678_v5  ;;  %v1166_v36 = vmul.f32 %v3698_v11, %v3522_v57  ;;  %2197 = vrsqrt.f32 %v3675_v7  ;;  %v2298_v57 = vld [vmem:[%s2881_s23 + $0x68] sm:$0xff] }
 0x171   : > { %4953 = vst [vmem:[#allocation47_spill] sm:$0xff] %v3689_v42  ;;  %v3713_v50 = vmul.f32 %v3559_v19, %v3527_v26  ;;  %v1183_v30 = vmul.f32 %v1167_v20, %v3689_v42  ;;  %v965_v38 = vmul.f32 %v2194_v17, %v964_v15  ;;  %v513_v59 = vmul.f32 %v2296_v41, %v2295_v12 }
 0x172   : > { %4954 = vst [vmem:[#allocation48_spill] sm:$0xff] %v3694_v31  ;;  %v3719_v52 = vadd.f32 %v1184_v8, %v3705_v60  ;;  %v1182_v3 = vmul.f32 %v1166_v36, %v3698_v11  ;;  %v561_v13 = vmul.f32 %v2297_v14, %v2295_v12  ;;  %v560_v34 = vmul.f32 %v2298_v57, %v3602_v28  ;;  %v3746_v12 = vpop.xlane.xlu1 %483 }
 0x173   : > { %4955 = vst [vmem:[#allocation49_spill] sm:$0xff] %v3698_v11  ;;  %v3726_v40 = vadd.f32 %v1183_v30, %v3713_v50  ;;  %v966_v19 = vmul.f32 0.5, %v965_v38  ;;  %543 = vadd.xlane.f32.xlu1 %v513_v59  ;;  %v3729_v20 = vmax.f32 %v3624_v4, 1e-24  ;;  %v3732_v15 = vmax.f32 %v3608_v63, 1e-24  ;;  %v3744_v38 = vpop.xlane.xlu0 %475 }
 0x174   : > { %4956 = vst [vmem:[#allocation50_spill] sm:$0xff] %v3705_v60  ;;  %v3734_v8 = vpop.eup %2195  ;;  %v3737_v36 = vadd.f32 %v1182_v3, %v3364_v47  ;;  %591 = vadd.xlane.f32.xlu2 %v561_v13  ;;  %589 = vadd.xlane.f32.xlu0 %v560_v34  ;;  %v3740_v28 = vmax.f32 %v3663_v23, 1e-24  ;;  %vm969_vm7 = vweird.f32 %v3617_v18  ;;  %vm970_vm8 = vweird.f32 %v2194_v17  ;;  %v4960_v59 = vld [vmem:[#allocation22_spill] sm:$0xff] }
 0x175   : > { %4957 = vst [vmem:[#allocation51_spill] sm:$0xff] %v3719_v52  ;;  %v967_v30 = vsub.f32 1.5, %v966_v19  ;;  %2199 = vrsqrt.f32 %v3729_v20  ;;  %v1137_v3 = vmul.f32 %v3375_v53, %v4960_v59  ;;  %v762_v14 = vmul.f32 %v3421_v32, %v3355_v29  ;;  %v2299_v34 = vld [vmem:[%s2732_s5 + $0x78] sm:$0xff]  ;;  %vm971_vm9 = vmor %vm969_vm7, %vm970_vm8 }
 0x176   : > { %4958 = vst [vmem:[#allocation52_spill] sm:$0xff] %v3726_v40  ;;  %v2198_v41 = vpop.eup %2197  ;;  %2201 = vrsqrt.f32 %v3732_v15  ;;  %v2300_v19 = vld [vmem:[%s2881_s23 + $0x78] sm:$0xff]  ;;  %v938_v52 = vmul.f32 %v3734_v8, %v3661_v46  ;;  %v3763_v9 = vmax.f32 %v3701_v16, 1e-24  ;;  %v3771_v37 = vmax.f32 %v3744_v38, 1e-24 }
 0x177   : > { %4959 = vst [vmem:[#allocation53_spill] sm:$0xff] %v3737_v36  ;;  %v968_v13 = vmul.f32 %v2194_v17, %v967_v30  ;;  %v928_v57 = vmul.f32 %v2198_v41, %v3675_v7  ;;  %2203 = vrsqrt.f32 %v3740_v28  ;;  %v562_v40 = vmul.f32 %v2300_v19, %v2299_v34  ;;  %v2301_v59 = vld [vmem:[%s2740_s8 + $0x78] sm:$0xff]  ;;  %v3773_v19 = vpop.xlane.xlu2 %485 }
 0x178   : > { %v514_v36 = vmul.f32 %v2301_v59, %v2299_v34  ;;  %v3766_v30 = vmax.f32 %v3665_v48, 1e-24  ;;  %v3776_v18 = vmul.f32 %v1137_v3, %v3375_v53  ;;  %v3779_v42 = vmul.f32 %v3421_v32, %v762_v14 }
 0x179   : > { %v3768_v25 = vsel %vm971_vm9, %v2194_v17, %v968_v13  ;;  %v929_v31 = vmul.f32 %v2198_v41, %v928_v57  ;;  %2205 = vrsqrt.f32 %v3763_v9  ;;  %vm933_vm10 = vweird.f32 %v3675_v7 }
 0x17a   : > { %4961 = vst [vmem:[#allocation22_spill] sm:$0xff] %v3776_v18  ;;  %v1187_v34 = vmul.f32 %v3768_v25, %v3553_v58  ;;  %vm999_vm11 = vweird.f32 %v3729_v20  ;;  %2207 = vrsqrt.f32 %v3766_v30  ;;  %v3789_v14 = vmul.f32 %v3734_v8, %v938_v52  ;;  %v3806_v0 = vpop.xlane.xlu1 %489 }
 0x17b   : > { %v2200_v59 = vpop.eup %2199  ;;  %v930_v17 = vmul.f32 0.5, %v929_v31  ;;  %593 = vadd.xlane.f32.xlu1 %v562_v40  ;;  %v3793_v58 = vmax.f32 %v3773_v19, 1e-24  ;;  %vm934_vm12 = vweird.f32 %v2198_v41  ;;  %vm989_vm13 = vweird.f32 %v3732_v15 }
 0x17c   : > { %v2202_v13 = vpop.eup %2201  ;;  %v1203_v3 = vmul.f32 %v1187_v34, %v3768_v25  ;;  %v994_v57 = vmul.f32 %v2200_v59, %v3729_v20  ;;  %545 = vadd.xlane.f32.xlu0 %v514_v36  ;;  %2209 = vrsqrt.f32 %v3771_v37  ;;  %vm979_vm14 = vweird.f32 %v3740_v28  ;;  %vm935_vm1 = vmor %vm933_vm10, %vm934_vm12 }
 0x17d   : > { %v2204_v31 = vpop.eup %2203  ;;  %v931_v53 = vsub.f32 1.5, %v930_v17  ;;  %v984_v26 = vmul.f32 %v2202_v13, %v3732_v15  ;;  %vm1000_vm15 = vweird.f32 %v2200_v59  ;;  %vm1029_vm0 = vweird.f32 %v3763_v9  ;;  %v3804_v17 = vpop.xlane.xlu0 %481 }
 0x17e   : > { %v3799_v40 = vadd.f32 %v1203_v3, %v3159_v39  ;;  %v995_v52 = vmul.f32 %v2200_v59, %v994_v57  ;;  %v974_v34 = vmul.f32 %v2204_v31, %v3740_v28  ;;  %vm990_vm2 = vweird.f32 %v2202_v13  ;;  %vm1001_vm8 = vmor %vm999_vm11, %vm1000_vm15 }
 0x17f   : > { %v932_v36 = vmul.f32 %v2198_v41, %v931_v53  ;;  %v985_v5 = vmul.f32 %v2202_v13, %v984_v26  ;;  %v2206_v11 = vpop.eup %2205  ;;  %2211 = vrsqrt.f32 %v3793_v58  ;;  %vm980_vm3 = vweird.f32 %v2204_v31  ;;  %vm991_vm10 = vmor %vm989_vm13, %vm990_vm2 }
 0x180   : > { %4962 = vst [vmem:[#allocation54_spill] sm:$0xff] %v3799_v40  ;;  %v996_v39 = vmul.f32 0.5, %v995_v52  ;;  %v975_v3 = vmul.f32 %v2204_v31, %v974_v34  ;;  %v3812_v57 = vpop.eup %2207  ;;  %v1024_v33 = vmul.f32 %v2206_v11, %v3763_v9  ;;  %vm1030_vm4 = vweird.f32 %v2206_v11  ;;  %vm981_vm11 = vmor %vm979_vm14, %vm980_vm3 }
 0x181   : > { %v3814_v53 = vsel %vm935_vm1, %v2198_v41, %v932_v36  ;;  %v986_v26 = vmul.f32 0.5, %v985_v5  ;;  %v1014_v34 = vmul.f32 %v3812_v57, %v3766_v30  ;;  %vm1019_vm5 = vweird.f32 %v3766_v30  ;;  %vm1031_vm13 = vmor %vm1029_vm0, %vm1030_vm4 }
 0x182   : > { %v1169_v60 = vmul.f32 %v3814_v53, %v3606_v24  ;;  %v997_v51 = vsub.f32 1.5, %v996_v39  ;;  %v976_v44 = vmul.f32 0.5, %v975_v3  ;;  %v2210_v7 = vpop.eup %2209  ;;  %v1025_v21 = vmul.f32 %v2206_v11, %v1024_v33 }
 0x183   : > { %v987_v52 = vsub.f32 1.5, %v986_v26  ;;  %vm1020_vm6 = vweird.f32 %v3812_v57  ;;  %v1004_v40 = vmul.f32 %v2210_v7, %v3771_v37  ;;  %vm1009_vm7 = vweird.f32 %v3771_v37 }
 0x184   : > { %v1185_v5 = vmul.f32 %v1169_v60, %v3814_v53  ;;  %v998_v41 = vmul.f32 %v2200_v59, %v997_v51  ;;  %v977_v36 = vsub.f32 1.5, %v976_v44  ;;  %v1026_v33 = vmul.f32 0.5, %v1025_v21  ;;  %vm1021_vm15 = vmor %vm1019_vm5, %vm1020_vm6 }
 0x185   : > { %v988_v24 = vmul.f32 %v2202_v13, %v987_v52  ;;  %v1015_v39 = vmul.f32 %v3812_v57, %v1014_v34  ;;  %vm1010_vm9 = vweird.f32 %v2210_v7  ;;  %v2212_v3 = vpop.eup %2211  ;;  %v1005_v44 = vmul.f32 %v2210_v7, %v1004_v40  ;;  %v3846_v34 = vpop.xlane.xlu2 %491 }
 0x186   : > { %v3831_v26 = vadd.f32 %v1185_v5, %v3776_v18  ;;  %v3833_v60 = vsel %vm1001_vm8, %v2200_v59, %v998_v41  ;;  %v978_v51 = vmul.f32 %v2204_v31, %v977_v36  ;;  %vm1059_vm12 = vweird.f32 %v3793_v58  ;;  %vm1011_vm0 = vmor %vm1009_vm7, %vm1010_vm9  ;;  %v4974_v18 = vld [vmem:[#allocation25_spill] sm:$0xff] }
 0x187   : > { %v1190_v21 = vmul.f32 %v3833_v60, %v3624_v4  ;;  %v3841_v20 = vsel %vm991_vm10, %v2202_v13, %v988_v24  ;;  %v1027_v52 = vsub.f32 1.5, %v1026_v33  ;;  %v1016_v59 = vmul.f32 0.5, %v1015_v39  ;;  %v3856_v24 = vpop.xlane.xlu0 %487  ;;  %v3858_v33 = vpop.xlane.xlu1 %495 }
 0x188   : > { %4963 = vst [vmem:[#allocation55_spill] sm:$0xff] %v3831_v26  ;;  %v1189_v15 = vmul.f32 %v3841_v20, %v3608_v63  ;;  %v3850_v5 = vsel %vm981_vm11, %v2204_v31, %v978_v51  ;;  %v1006_v40 = vmul.f32 0.5, %v1005_v44  ;;  %v1054_v41 = vmul.f32 %v2212_v3, %v3793_v58 }
 0x189   : > { %v1206_v4 = vmul.f32 %v1190_v21, %v3833_v60  ;;  %v1188_v13 = vmul.f32 %v3850_v5, %v3663_v23  ;;  %v1028_v36 = vmul.f32 %v2206_v11, %v1027_v52  ;;  %v1017_v28 = vsub.f32 1.5, %v1016_v59  ;;  %4964 = vst [vmem:[#allocation56_spill] sm:$0xff] %v3858_v33 }
 0x18a   : > { %v1205_v39 = vmul.f32 %v1189_v15, %v3841_v20  ;;  %v1007_v63 = vsub.f32 1.5, %v1006_v40  ;;  %v1055_v31 = vmul.f32 %v2212_v3, %v1054_v41  ;;  %vm1060_vm14 = vweird.f32 %v2212_v3 }
 0x18b   : > { %v3865_v51 = vadd.f32 %v1206_v4, %v3277_v55  ;;  %v1204_v23 = vmul.f32 %v1188_v13, %v3850_v5  ;;  %v3868_v44 = vsel %vm1031_vm13, %v2206_v11, %v1028_v36  ;;  %v1018_v21 = vmul.f32 %v3812_v57, %v1017_v28  ;;  %vm1061_vm1 = vmor %vm1059_vm12, %vm1060_vm14 }
 0x18c   : > { %v3872_v52 = vadd.f32 %v1205_v39, %v3152_v6  ;;  %v1193_v59 = vmul.f32 %v3868_v44, %v3701_v16  ;;  %v1008_v9 = vmul.f32 %v2210_v7, %v1007_v63  ;;  %v1056_v55 = vmul.f32 0.5, %v1055_v31 }
 0x18d   : > { %4965 = vst [vmem:[#allocation57_spill] sm:$0xff] %v3865_v51  ;;  %v3881_v15 = vadd.f32 %v1204_v23, %v3286_v49  ;;  %v3884_v11 = vsel %vm1021_vm15, %v3812_v57, %v1018_v21  ;;  %v3890_v6 = vmax.f32 %v3746_v12, 1e-24  ;;  %v3893_v16 = vmax.f32 %v3804_v17, 1e-24 }
 0x18e   : > { %v1209_v30 = vmul.f32 %v1193_v59, %v3868_v44  ;;  %v1192_v40 = vmul.f32 %v3884_v11, %v3665_v48  ;;  %v3898_v49 = vsel %vm1011_vm0, %v2210_v7, %v1008_v9  ;;  %v1057_v41 = vsub.f32 1.5, %v1056_v55  ;;  %v3922_v7 = vpop.xlane.xlu2 %497 }
 0x18f   : > { %v940_v57 = vmul.f32 0.5, %v3789_v14  ;;  %v1191_v37 = vmul.f32 %v3898_v49, %v3744_v38  ;;  %2213 = vrsqrt.f32 %v3890_v6  ;;  %v3914_v14 = vmax.f32 %v3846_v34, 1e-24  ;;  %v3938_v21 = vpop.xlane.xlu0 %493  ;;  %v518_v59 = vpop.xlane.xlu1 %517 }
 0x190   : > { %v3905_v4 = vadd.f32 %v1209_v30, %v3346_v1  ;;  %v1208_v13 = vmul.f32 %v1192_v40, %v3884_v11  ;;  %v1058_v36 = vmul.f32 %v2212_v3, %v1057_v41  ;;  %2215 = vrsqrt.f32 %v3893_v16 }
 0x191   : > { %v1207_v48 = vmul.f32 %v1191_v37, %v3898_v49  ;;  %v3917_v38 = vmax.f32 %v3806_v0, 1e-24  ;;  %v3920_v1 = vmax.f32 %v3856_v24, 1e-24  ;;  %v3925_v28 = vmul.f32 0.5, %v3779_v42 }
 0x192   : > { %4966 = vst [vmem:[#allocation58_spill] sm:$0xff] %v3905_v4  ;;  %v3928_v39 = vadd.f32 %v1208_v13, %v3238_v56  ;;  %v3930_v63 = vsel %vm1061_vm1, %v2212_v3, %v1058_v36  ;;  %v941_v58 = vsub.f32 1.5, %v940_v57  ;;  %2217 = vrsqrt.f32 %v3914_v14 }
 0x193   : > { %4968 = vst [vmem:[#allocation60_spill] sm:$0xff] %v3930_v63  ;;  %v3933_v31 = vadd.f32 %v1207_v48, %v3122_v22  ;;  %v1196_v23 = vmul.f32 %v3930_v63, %v3773_v19  ;;  %2219 = vrsqrt.f32 %v3917_v38  ;;  %v3942_v42 = vmax.f32 %v3922_v7, 1e-24 }
 0x194   : > { %4967 = vst [vmem:[#allocation59_spill] sm:$0xff] %v3928_v39  ;;  %2221 = vrsqrt.f32 %v3920_v1  ;;  %v3948_v19 = vmax.f32 %v3938_v21, 1e-24  ;;  %v1236_v55 = vmul.f32 2.0, %v518_v59  ;;  %v3952_v40 = vmul.f32 %v3734_v8, %v941_v58  ;;  %v4971_v59 = vld [vmem:[#allocation21_spill] sm:$0xff] }
 0x195   : > { %4969 = vst [vmem:[#allocation61_spill] sm:$0xff] %v3933_v31  ;;  %v2214_v56 = vpop.eup %2213  ;;  %v1212_v3 = vmul.f32 %v1196_v23, %v3930_v63  ;;  %2223 = vrsqrt.f32 %v3942_v42  ;;  %v3960_v13 = vmax.f32 %v3858_v33, 1e-24  ;;  %v1252_v36 = vmul.f32 %v3419_v45, %v3213_v35 }
 0x196   : > { %v2216_v22 = vpop.eup %2215  ;;  %v1044_v9 = vmul.f32 %v2214_v56, %v3890_v6  ;;  %v3966_v58 = vmul.f32 %v3432_v43, %v3105_v10  ;;  %2225 = vrsqrt.f32 %v3948_v19  ;;  %vm1050_vm2 = vweird.f32 %v2214_v56 }
 0x197   : > { %v3955_v41 = vadd.f32 %v1212_v3, %v3382_v27  ;;  %v1034_v57 = vmul.f32 %v2216_v22, %v3893_v16  ;;  %v3970_v27 = vmul.f32 %v3471_v2, %v4971_v59  ;;  %v4972_v3 = vld [vmem:[#allocation20_spill] sm:$0xff]  ;;  %v3978_v45 = vmul.f32 %v1252_v36, %v1236_v55  ;;  %v4975_v2 = vld [vmem:[#allocation39_spill] sm:$0xff] }
 0x198   : > { %v1045_v37 = vmul.f32 %v2214_v56, %v1044_v9  ;;  %v2218_v48 = vpop.eup %2217  ;;  %v4973_v9 = vld [vmem:[#allocation37_spill] sm:$0xff]  ;;  %v3983_v39 = vmul.f32 %v4975_v2, %v4974_v18  ;;  %vm944_vm3 = vweird.f32 %v3734_v8  ;;  %2227 = vrsqrt.f32 %v3960_v13 }
 0x199   : > { %4970 = vst [vmem:[#allocation62_spill] sm:$0xff] %v3955_v41  ;;  %v1035_v23 = vmul.f32 %v2216_v22, %v1034_v57  ;;  %v3974_v30 = vmul.f32 %v4973_v9, %v4972_v3  ;;  %v2220_v26 = vpop.eup %2219  ;;  %v1084_v4 = vmul.f32 %v2218_v48, %v3914_v14  ;;  %vm1049_vm4 = vweird.f32 %v3890_v6 }
 0x19a   : > { %v1046_v41 = vmul.f32 0.5, %v1045_v37  ;;  %v2222_v57 = vpop.eup %2221  ;;  %v1074_v31 = vmul.f32 %v2220_v26, %v3917_v38  ;;  %4976 = vst [vmem:[#allocation21_spill] sm:$0xff] %v3983_v39  ;;  %vm1040_vm5 = vweird.f32 %v2216_v22  ;;  %vm943_vm6 = vweird.f32 %v3661_v46  ;;  %vm1051_vm8 = vmor %vm1049_vm4, %vm1050_vm2 }
 0x19b   : > { %v1036_v43 = vmul.f32 0.5, %v1035_v23  ;;  %v1085_v63 = vmul.f32 %v2218_v48, %v1084_v4  ;;  %v1064_v37 = vmul.f32 %v2222_v57, %v3920_v1  ;;  %v3989_v23 = vpop.eup %2223  ;;  %vm1039_vm7 = vweird.f32 %v3893_v16 }
 0x19c   : > { %v1047_v9 = vsub.f32 1.5, %v1046_v41  ;;  %v1075_v36 = vmul.f32 %v2220_v26, %v1074_v31  ;;  %vm1089_vm9 = vweird.f32 %v3914_v14  ;;  %vm1090_vm10 = vweird.f32 %v2218_v48  ;;  %v3995_v6 = vpop.eup %2225  ;;  %vm1041_vm12 = vmor %vm1039_vm7, %vm1040_vm5 }
 0x19d   : > { %v1037_v55 = vsub.f32 1.5, %v1036_v43  ;;  %v1086_v2 = vmul.f32 0.5, %v1085_v63  ;;  %v1065_v51 = vmul.f32 %v2222_v57, %v1064_v37  ;;  %vm1080_vm11 = vweird.f32 %v2220_v26  ;;  %vm1091_vm14 = vmor %vm1089_vm9, %vm1090_vm10 }
 0x19e   : > { %v1048_v33 = vmul.f32 %v2214_v56, %v1047_v9  ;;  %v1076_v41 = vmul.f32 0.5, %v1075_v36  ;;  %vm1070_vm13 = vweird.f32 %v2222_v57  ;;  %vm1079_vm15 = vweird.f32 %v3917_v38  ;;  %vm945_vm5 = vmor %vm943_vm6, %vm944_vm3 }
 0x19f   : > { %v1038_v4 = vmul.f32 %v2216_v22, %v1037_v55  ;;  %v1087_v31 = vsub.f32 1.5, %v1086_v2  ;;  %v1066_v9 = vmul.f32 0.5, %v1065_v51  ;;  %v4004_v55 = vpop.eup %2227  ;;  %v1094_v51 = vmul.f32 %v3995_v6, %v3948_v19  ;;  %vm1081_vm0 = vmor %vm1079_vm15, %vm1080_vm11 }
 0x1a0   : > { %v3997_v43 = vsel %vm1051_vm8, %v2214_v56, %v1048_v33  ;;  %v1077_v37 = vsub.f32 1.5, %v1076_v41  ;;  %v1114_v56 = vmul.f32 %v3989_v23, %v3942_v42  ;;  %vm1069_vm1 = vweird.f32 %v3920_v1 }
 0x1a1   : > { %v1195_v16 = vmul.f32 %v3997_v43, %v3746_v12  ;;  %v4002_v63 = vsel %vm1041_vm12, %v2216_v22, %v1038_v4  ;;  %v1088_v39 = vmul.f32 %v2218_v48, %v1087_v31  ;;  %v1067_v33 = vsub.f32 1.5, %v1066_v9  ;;  %vm1071_vm2 = vmor %vm1069_vm1, %vm1070_vm13 }
 0x1a2   : > { %v1194_v36 = vmul.f32 %v4002_v63, %v3804_v17  ;;  %v1078_v12 = vmul.f32 %v2220_v26, %v1077_v37  ;;  %v1104_v38 = vmul.f32 %v4004_v55, %v3960_v13  ;;  %vm767_vm4 = vweird.f32 %v3355_v29  ;;  %v564_v37 = vpop.xlane.xlu2 %563 }
 0x1a3   : > { %v1211_v2 = vmul.f32 %v1195_v16, %v3997_v43  ;;  %v4018_v17 = vsel %vm1091_vm14, %v2218_v48, %v1088_v39  ;;  %v1068_v4 = vmul.f32 %v2222_v57, %v1067_v33  ;;  %v4977_v39 = vld [vmem:[#allocation32_spill] sm:$0xff]  ;;  %v1095_v16 = vmul.f32 %v3995_v6, %v1094_v51 }
 0x1a4   : > { %v1210_v22 = vmul.f32 %v1194_v36, %v4002_v63  ;;  %v1199_v14 = vmul.f32 %v4018_v17, %v3846_v34  ;;  %v4027_v31 = vsel %vm1081_vm0, %v2220_v26, %v1078_v12  ;;  %vm768_vm7 = vweird.f32 %v3421_v32  ;;  %v516_v12 = vpop.xlane.xlu0 %515 }
 0x1a5   : > { %v4023_v41 = vadd.f32 %v1211_v2, %v3295_v62  ;;  %v1198_v9 = vmul.f32 %v4027_v31, %v3806_v0  ;;  %v4037_v1 = vsel %vm1071_vm2, %v2222_v57, %v1068_v4  ;;  %v1115_v62 = vmul.f32 %v3989_v23, %v1114_v56  ;;  %vm769_vm8 = vmor %vm767_vm4, %vm768_vm7 }
 0x1a6   : > { %v4033_v48 = vadd.f32 %v1210_v22, %v4977_v39  ;;  %v1215_v26 = vmul.f32 %v1199_v14, %v4018_v17  ;;  %v1197_v34 = vmul.f32 %v4037_v1, %v3856_v24  ;;  %v4978_v0 = vsub.f32 1.5, %v3925_v28  ;;  %v4981_v22 = vld [vmem:[#allocation36_spill] sm:$0xff] }
 0x1a7   : > { %v4055_v36 = vsel %vm945_vm5, %v3734_v8, %v3952_v40  ;;  %v1214_v46 = vmul.f32 %v1198_v9, %v4027_v31  ;;  %v1105_v56 = vmul.f32 %v4004_v55, %v1104_v38  ;;  %v1096_v2 = vmul.f32 0.5, %v1095_v16 }
 0x1a8   : > { %v766_v57 = vmul.f32 %v3421_v32, %v4978_v0  ;;  %v4059_v33 = vadd.f32 %v1215_v26, %v3713_v50  ;;  %v1213_v24 = vmul.f32 %v1197_v34, %v4037_v1  ;;  %v1116_v51 = vmul.f32 0.5, %v1115_v62  ;;  %v4983_v62 = vld [vmem:[#allocation54_spill] sm:$0xff]  ;;  %v4987_v34 = vld [vmem:[#allocation41_spill] sm:$0xff]  ;;  %v4989_v0 = vld [vmem:[#allocation12_spill] sm:$0xff] }
 0x1a9   : > { %v4064_v28 = vadd.f32 %v1214_v46, %v3364_v47  ;;  %v1284_v4 = vsub.f32 %v4981_v22, %v3978_v45  ;;  %v1315_v8 = vmul.f32 2.0, %v564_v37  ;;  %v1097_v14 = vsub.f32 1.5, %v1096_v2  ;;  %v4988_v37 = vld [vmem:[#allocation29_spill] sm:$0xff]  ;;  %v4992_v2 = vld [vmem:[#allocation43_spill] sm:$0xff] }
 0x1aa   : > { %4979 = vst [vmem:[#allocation20_spill] sm:$0xff] %v4059_v33  ;;  %v4069_v40 = vadd.f32 %v1213_v24, %v3367_v54  ;;  %vm1100_vm3 = vweird.f32 %v3995_v6  ;;  %v1331_v50 = vmul.f32 %v3768_v25, %v3105_v10  ;;  %vm1099_vm6 = vweird.f32 %v3948_v19  ;;  %v520_v24 = vpop.xlane.xlu1 %519  ;;  %v5014_v33 = vld [vmem:[#allocation21_spill] sm:$0xff] }
 0x1ab   : > { %4980 = vst [vmem:[#allocation37_spill] sm:$0xff] %v4064_v28  ;;  %v4075_v38 = vmax.f32 %v1284_v4, 0.0  ;;  %v1235_v47 = vmul.f32 2.0, %v516_v12  ;;  %v1333_v39 = vmul.f32 %v3841_v20, %v4971_v59  ;;  %v1098_v54 = vmul.f32 %v3995_v6, %v1097_v14  ;;  %vm1101_vm9 = vmor %vm1099_vm6, %vm1100_vm3  ;;  %v4994_v14 = vld [vmem:[#allocation14_spill] sm:$0xff] }
 0x1ac   : > { %4982 = vst [vmem:[#allocation25_spill] sm:$0xff] %v4069_v40  ;;  %v1347_v45 = vmul.f32 %v1331_v50, %v1315_v8  ;;  %v1332_v9 = vmul.f32 %v3850_v5, %v3213_v35  ;;  %v4088_v10 = vmul.f32 %v3833_v60, %v4974_v18  ;;  %v4091_v25 = vsel %vm769_vm8, %v3421_v32, %v766_v57  ;;  %v4984_v32 = vld [vmem:[#allocation24_spill] sm:$0xff]  ;;  %v4985_v60 = vld [vmem:[#allocation19_spill] sm:$0xff] }
 0x1ad   : > { %v1170_v20 = vmul.f32 %v4055_v36, %v3524_v61  ;;  %v1106_v19 = vmul.f32 0.5, %v1105_v56  ;;  %2229 = vrsqrt.f32 %v4075_v38  ;;  %v1117_v29 = vsub.f32 1.5, %v1116_v51  ;;  %v4986_v61 = vld [vmem:[#allocation28_spill] sm:$0xff]  ;;  %v4991_v56 = vld [vmem:[#allocation27_spill] sm:$0xff] }
 0x1ae   : > { %v4097_v59 = vsel %vm1101_vm9, %v3995_v6, %v1098_v54  ;;  %v1363_v35 = vsub.f32 %v4983_v62, %v1347_v45  ;;  %v1267_v5 = vmul.f32 %v3966_v58, %v1235_v47  ;;  %v4105_v26 = vmul.f32 %v4985_v60, %v4984_v32  ;;  %v4990_v58 = vld [vmem:[#allocation38_spill] sm:$0xff]  ;;  %v4993_v8 = vld [vmem:[#allocation31_spill] sm:$0xff] }
 0x1af   : > { %v1200_v18 = vmul.f32 %v4097_v59, %v3938_v21  ;;  %v4109_v16 = vmul.f32 %v4987_v34, %v4986_v61  ;;  %v4113_v57 = vmul.f32 %v4989_v0, %v4988_v37  ;;  %vm1119_vm10 = vweird.f32 %v3942_v42  ;;  %v568_v21 = vpop.xlane.xlu2 %567  ;;  %v4995_v62 = vld [vmem:[#allocation50_spill] sm:$0xff]  ;;  %v4997_v0 = vld [vmem:[#allocation33_spill] sm:$0xff] }
 0x1b0   : > { %v4116_v6 = vmax.f32 %v1363_v35, 0.0  ;;  %v1283_v46 = vsub.f32 %v4990_v58, %v1267_v5  ;;  %v4121_v12 = vmul.f32 %v4992_v2, %v4991_v56  ;;  %v1237_v22 = vmul.f32 2.0, %v520_v24  ;;  %v5000_v24 = vld [vmem:[#allocation49_spill] sm:$0xff]  ;;  %v5002_v2 = vld [vmem:[#allocation35_spill] sm:$0xff] }
 0x1b1   : > { %v1216_v51 = vmul.f32 %v1200_v18, %v4097_v59  ;;  %v1317_v4 = vmul.f32 2.0, %v568_v21  ;;  %v4126_v50 = vmul.f32 %v4994_v14, %v4993_v8  ;;  %v1118_v47 = vmul.f32 %v3989_v23, %v1117_v29  ;;  %v4998_v29 = vld [vmem:[#allocation15_spill] sm:$0xff]  ;;  %v5003_v14 = vld [vmem:[#allocation45_spill] sm:$0xff] }
 0x1b2   : > { %vm1120_vm12 = vweird.f32 %v3989_v23  ;;  %v1107_v54 = vsub.f32 1.5, %v1106_v19  ;;  %2231 = vrsqrt.f32 %v4116_v6  ;;  %v4136_v5 = vmax.f32 %v1283_v46, 0.0  ;;  %v4999_v19 = vld [vmem:[#allocation30_spill] sm:$0xff] }
 0x1b3   : > { %v4131_v45 = vpop.eup %2229  ;;  %v4134_v35 = vadd.f32 %v1216_v51, %v4995_v62  ;;  %v1269_v18 = vmul.f32 %v3970_v27, %v1237_v22  ;;  %v1349_v60 = vmul.f32 %v1333_v39, %v1317_v4  ;;  %v4143_v58 = vmul.f32 %v4998_v29, %v4997_v0  ;;  %v5005_v46 = vld [vmem:[#allocation26_spill] sm:$0xff]  ;;  %v5006_v22 = vld [vmem:[#allocation23_spill] sm:$0xff]  ;;  %vm1121_vm13 = vmor %vm1119_vm10, %vm1120_vm12 }
 0x1b4   : > { %v1408_v34 = vmul.f32 %v4131_v45, %v4075_v38  ;;  %v4147_v21 = vmul.f32 %v5000_v24, %v4999_v19  ;;  %v4151_v51 = vmul.f32 %v5003_v14, %v5002_v2  ;;  %v1138_v62 = vmul.f32 %v4091_v25, %v5005_v46  ;;  %v566_v24 = vpop.xlane.xlu0 %565 }
 0x1b5   : > { %4996 = vst [vmem:[#allocation39_spill] sm:$0xff] %v4134_v35  ;;  %v1186_v27 = vmul.f32 %v1170_v20, %v4055_v36  ;;  %2233 = vrsqrt.f32 %v4136_v5  ;;  %v1108_v39 = vmul.f32 %v4004_v55, %v1107_v54  ;;  %vm1110_vm11 = vweird.f32 %v4004_v55 }
 0x1b6   : > { %5001 = vst [vmem:[#allocation32_spill] sm:$0xff] %v4147_v21  ;;  %v1285_v4 = vsub.f32 %v5006_v22, %v1269_v18  ;;  %v1365_v29 = vsub.f32 %v3872_v52, %v1349_v60  ;;  %v1409_v14 = vmul.f32 %v4131_v45, %v1408_v34  ;;  %v1316_v46 = vmul.f32 2.0, %v566_v24  ;;  %v5008_v24 = vld [vmem:[#allocation47_spill] sm:$0xff]  ;;  %v5015_v21 = vld [vmem:[#allocation57_spill] sm:$0xff] }
 0x1b7   : > { %5004 = vst [vmem:[#allocation36_spill] sm:$0xff] %v4151_v51  ;;  %v4168_v20 = vmul.f32 %v3884_v11, %v4984_v32  ;;  %v4172_v54 = vmul.f32 %v3898_v49, %v4972_v3  ;;  %v4175_v52 = vsel %vm1121_vm13, %v3989_v23, %v1118_v47  ;;  %v4183_v42 = vmul.f32 %v3868_v44, %v4988_v37  ;;  %v5007_v32 = vld [vmem:[#allocation42_spill] sm:$0xff] }
 0x1b8   : > { %v2232_v18 = vpop.eup %2231  ;;  %v4177_v60 = vmax.f32 %v1285_v4, 0.0  ;;  %v4179_v22 = vmax.f32 %v1365_v29, 0.0  ;;  %v1348_v11 = vmul.f32 %v1332_v9, %v1316_v46  ;;  %v4188_v35 = vmul.f32 %v5008_v24, %v5007_v32  ;;  %v5010_v49 = vld [vmem:[#allocation34_spill] sm:$0xff] }
 0x1b9   : > { %v1604_v34 = vmul.f32 %v2232_v18, %v4116_v6  ;;  %v4192_v3 = vmul.f32 %v3814_v53, %v5010_v49  ;;  %vm1109_vm14 = vweird.f32 %v3960_v13  ;;  %v4197_v47 = vmul.f32 %v1138_v62, %v4091_v25 }
 0x1ba   : > { %5009 = vst [vmem:[#allocation54_spill] sm:$0xff] %v4188_v35  ;;  %2235 = vrsqrt.f32 %v4177_v60  ;;  %vm1111_vm15 = vmor %vm1109_vm14, %vm1110_vm11  ;;  %v1410_v44 = vmul.f32 0.5, %v1409_v14  ;;  %v4204_v37 = vmul.f32 %v4175_v52, %v3922_v7  ;;  %v1364_v62 = vsub.f32 %v3881_v15, %v1348_v11 }
 0x1bb   : > { %5011 = vst [vmem:[#allocation24_spill] sm:$0xff] %v4192_v3  ;;  %v2234_v23 = vpop.eup %2233  ;;  %v1605_v9 = vmul.f32 %v2232_v18, %v1604_v34  ;;  %2237 = vrsqrt.f32 %v4179_v22  ;;  %v4207_v53 = vsel %vm1111_vm15, %v4004_v55, %v1108_v39  ;;  %v4212_v29 = vadd.f32 %v1186_v27, %v4197_v47  ;;  %v570_v55 = vpop.xlane.xlu1 %569 }
 0x1bc   : > { %v1396_v13 = vmul.f32 %v2234_v23, %v4136_v5  ;;  %v4216_v14 = vmul.f32 %v4055_v36, %v4091_v25  ;;  %vm1610_vm0 = vcmp.eq.f32.partialorder %v4116_v6, inf  ;;  %vm1612_vm1 = vcmp.eq.f32.partialorder %v4116_v6, 0.0  ;;  %v524_v39 = vpop.xlane.xlu2 %523  ;;  %v522_v11 = vpop.xlane.xlu0 %521 }
 0x1bd   : > { %v1606_v4 = vmul.f32 0.5, %v1605_v9  ;;  %5012 = vst [vmem:[#allocation19_spill] sm:$0xff] %v4212_v29  ;;  %v1411_v34 = vsub.f32 1.5, %v1410_v44  ;;  %v4220_v9 = vmax.f32 %v1364_v62, 0.0  ;;  %v1318_v15 = vmul.f32 2.0, %v570_v55 }
 0x1be   : > { %5013 = vst [vmem:[#allocation28_spill] sm:$0xff] %v4216_v14  ;;  %v1397_v46 = vmul.f32 %v2234_v23, %v1396_v13  ;;  %v1613_v29 = vand.u32 2147483648, %v4116_v6  ;;  %v1239_v36 = vmul.f32 2.0, %v524_v39  ;;  %v1238_v14 = vmul.f32 2.0, %v522_v11 }
 0x1bf   : > { %v1607_v24 = vsub.f32 1.5, %v1606_v4  ;;  %vm1402_vm2 = vcmp.eq.f32.partialorder %v4136_v5, inf  ;;  %2239 = vrsqrt.f32 %v4220_v9  ;;  %vm1404_vm4 = vcmp.eq.f32.partialorder %v4136_v5, 0.0 }
 0x1c0   : > { %v2236_v27 = vpop.eup %2235  ;;  %v1398_v3 = vmul.f32 0.5, %v1397_v46  ;;  %v1405_v4 = vand.u32 2147483648, %v4136_v5  ;;  %v1412_v55 = vmul.f32 %v4131_v45, %v1411_v34  ;;  %v1271_v7 = vmul.f32 %v3974_v30, %v1239_v36 }
 0x1c1   : > { %v2238_v35 = vpop.eup %2237  ;;  %v1608_v51 = vmul.f32 %v2232_v18, %v1607_v24  ;;  %v1420_v13 = vmul.f32 %v2236_v27, %v4177_v60  ;;  %v1350_v18 = vmul.f32 %v4088_v10, %v1318_v15  ;;  %v1270_v40 = vmul.f32 %v5014_v33, %v1238_v14  ;;  %v5016_v33 = vld [vmem:[#allocation40_spill] sm:$0xff] }
 0x1c2   : > { %v1399_v44 = vsub.f32 1.5, %v1398_v3  ;;  %v1628_v62 = vmul.f32 %v2238_v35, %v4179_v22  ;;  %vm1414_vm5 = vcmp.eq.f32.partialorder %v4075_v38, inf  ;;  %v1287_v14 = vsub.f32 %v5016_v33, %v1271_v7  ;;  %v5018_v33 = vld [vmem:[#allocation56_spill] sm:$0xff] }
 0x1c3   : > { %v1609_v46 = vmul.f32 %v1608_v51, %v4116_v6  ;;  %v1421_v39 = vmul.f32 %v2236_v27, %v1420_v13  ;;  %v1366_v45 = vsub.f32 %v5015_v21, %v1350_v18  ;;  %v4241_v51 = vmul.f32 %v3997_v43, %v4991_v56  ;;  %v5017_v13 = vld [vmem:[#allocation13_spill] sm:$0xff] }
 0x1c4   : > { %v1400_v24 = vmul.f32 %v2234_v23, %v1399_v44  ;;  %v1629_v11 = vmul.f32 %v2238_v35, %v1628_v62  ;;  %v1286_v44 = vsub.f32 %v5017_v13, %v1270_v40  ;;  %v4252_v21 = vmul.f32 %v4002_v63, %v4986_v61 }
 0x1c5   : > { %v1611_v3 = vsel %vm1610_vm0, %v4116_v6, %v1609_v46  ;;  %v1422_v28 = vmul.f32 0.5, %v1421_v39  ;;  %v2240_v34 = vpop.eup %2239  ;;  %v4247_v36 = vmax.f32 %v1366_v45, 0.0  ;;  %vm1426_vm7 = vcmp.eq.f32.partialorder %v4177_v60, inf }
 0x1c6   : > { %v1614_v10 = vsel %vm1612_vm1, %v1613_v29, %v1611_v3  ;;  %v1401_v30 = vmul.f32 %v1400_v24, %v4136_v5  ;;  %v1630_v23 = vmul.f32 0.5, %v1629_v11  ;;  %v1616_v56 = vmul.f32 %v2240_v34, %v4220_v9 }
 0x1c7   : > { %v1423_v15 = vsub.f32 1.5, %v1422_v28  ;;  %2241 = vrsqrt.f32 %v4247_v36  ;;  %v4262_v40 = vmax.f32 %v1287_v14, 0.0  ;;  %v1413_v63 = vmul.f32 %v1412_v55, %v4075_v38 }
 0x1c8   : > { %v1403_v43 = vsel %vm1402_vm2, %v4136_v5, %v1401_v30  ;;  %v1631_v6 = vsub.f32 1.5, %v1630_v23  ;;  %v1617_v62 = vmul.f32 %v2240_v34, %v1616_v56  ;;  %vm1428_vm3 = vcmp.eq.f32.partialorder %v4177_v60, 0.0  ;;  %v526_v5 = vpop.xlane.xlu1 %525  ;;  %v574_v30 = vpop.xlane.xlu2 %573 }
 0x1c9   : > { %v1406_v28 = vsel %vm1404_vm4, %v1405_v4, %v1403_v43  ;;  %v1424_v29 = vmul.f32 %v2236_v27, %v1423_v15  ;;  %v1429_v39 = vand.u32 2147483648, %v4177_v60  ;;  %vm1634_vm6 = vcmp.eq.f32.partialorder %v4179_v22, inf }
 0x1ca   : > { %v1795_v61 = vsub.f32 %v1406_v28, %v1614_v10  ;;  %v1632_v7 = vmul.f32 %v2238_v35, %v1631_v6  ;;  %vm1636_vm8 = vcmp.eq.f32.partialorder %v4179_v22, 0.0  ;;  %v1637_v4 = vand.u32 2147483648, %v4179_v22 }
 0x1cb   : > { %v1425_v46 = vmul.f32 %v1424_v29, %v4177_v60  ;;  %v1618_v18 = vmul.f32 0.5, %v1617_v62  ;;  %2243 = vrsqrt.f32 %v4262_v40  ;;  %v4276_v55 = vmax.f32 %v1286_v44, 0.0 }
 0x1cc   : > { %v1633_v27 = vmul.f32 %v1632_v7, %v4179_v22  ;;  %v1240_v24 = vmul.f32 2.0, %v526_v5  ;;  %v1415_v11 = vsel %vm1414_vm5, %v4075_v38, %v1413_v63  ;;  %v1201_v14 = vmul.f32 %v4207_v53, %v5018_v33  ;;  %v5021_v5 = vld [vmem:[#allocation60_spill] sm:$0xff] }
 0x1cd   : > { %v1427_v35 = vsel %vm1426_vm7, %v4177_v60, %v1425_v46  ;;  %v1619_v10 = vsub.f32 1.5, %v1618_v18  ;;  %v2242_v23 = vpop.eup %2241  ;;  %v1417_v60 = vand.u32 2147483648, %v4075_v38  ;;  %2245 = vrsqrt.f32 %v4276_v55  ;;  %v5020_v46 = vld [vmem:[#allocation17_spill] sm:$0xff] }
 0x1ce   : > { %v4281_v3 = vsel %vm1428_vm3, %v1429_v39, %v1427_v35  ;;  %v1635_v45 = vsel %vm1634_vm6, %v4179_v22, %v1633_v27  ;;  %vm1416_vm9 = vcmp.eq.f32.partialorder %v4075_v38, 0.0  ;;  %v1640_v22 = vmul.f32 %v2242_v23, %v4247_v36 }
 0x1cf   : > { %v4287_v15 = vsel %vm1636_vm8, %v1637_v4, %v1635_v45  ;;  %v1620_v44 = vmul.f32 %v2240_v34, %v1619_v10  ;;  %v1418_v43 = vsel %vm1416_vm9, %v1417_v60, %v1415_v11  ;;  %v5019_v6 = vlaneseq  ;;  %v5022_v10 = vld [vmem:[#allocation59_spill] sm:$0xff] }
 0x1d0   : > { %v1797_v13 = vsub.f32 %v4281_v3, %v4287_v15  ;;  %v1272_v28 = vmul.f32 %v4105_v26, %v1240_v24  ;;  %v1320_v29 = vmul.f32 2.0, %v574_v30  ;;  %vm1622_vm10 = vcmp.eq.f32.partialorder %v4220_v9, inf }
 0x1d1   : > { %v4295_v56 = vand.u32 127, %v5019_v6  ;;  %v1621_v63 = vmul.f32 %v1620_v44, %v4220_v9  ;;  %v1625_v7 = vand.u32 2147483648, %v4220_v9  ;;  %v1641_v38 = vmul.f32 %v2242_v23, %v1640_v22  ;;  %v4301_v62 = vpop.eup %2243 }
 0x1d2   : > { %v1288_v34 = vsub.f32 %v5020_v46, %v1272_v28  ;;  %v1352_v39 = vmul.f32 %v4168_v20, %v1320_v29  ;;  %v4307_v27 = vmul.f32 %v5021_v5, %v4997_v0  ;;  %v4311_v26 = vmul.f32 %v4027_v31, %v4999_v19 }
 0x1d3   : > { %v1811_v4 = vadd.f32 1.0, %v1795_v61  ;;  %v1623_v18 = vsel %vm1622_vm10, %v4220_v9, %v1621_v63  ;;  %vm1624_vm12 = vcmp.eq.f32.partialorder %v4220_v9, 0.0  ;;  %v1642_v35 = vmul.f32 0.5, %v1641_v38  ;;  %v2246_v24 = vpop.eup %2245  ;;  %v572_v9 = vpop.xlane.xlu0 %571 }
 0x1d4   : > { %v1626_v11 = vsel %vm1624_vm12, %v1625_v7, %v1623_v18  ;;  %v4315_v45 = vmax.f32 %v1288_v34, 0.0  ;;  %v1368_v20 = vsub.f32 %v5022_v10, %v1352_v39  ;;  %v4320_v0 = vmul.f32 %v4037_v1, %v4993_v8 }
 0x1d5   : > { %v1218_v31 = vmul.f32 %v4204_v37, %v4175_v52  ;;  %v1796_v19 = vsub.f32 %v1418_v43, %v1626_v11  ;;  %v1643_v61 = vsub.f32 1.5, %v1642_v35  ;;  %v1444_v30 = vmul.f32 %v4301_v62, %v4262_v40 }
 0x1d6   : > { %v1217_v33 = vmul.f32 %v1201_v14, %v4207_v53  ;;  %v1866_v60 = vadd.s32 4294967288, %v4295_v56  ;;  %v1432_v44 = vmul.f32 %v2246_v24, %v4276_v55  ;;  %2247 = vrsqrt.f32 %v4315_v45 }
 0x1d7   : > { %v1827_v22 = vmax.f32 %v1811_v4, 0.0  ;;  %vm1868_vm11 = vcmask 130112   ;;  %v1812_v1 = vadd.f32 1.0, %v1796_v19  ;;  %v1644_v8 = vmul.f32 %v2242_v23, %v1643_v61  ;;  %v530_v19 = vpop.xlane.xlu2 %529 }
 0x1d8   : > { %vm1646_vm13 = vcmp.eq.f32.partialorder %v4247_v36, inf  ;;  %v1433_v37 = vmul.f32 %v2246_v24, %v1432_v44  ;;  %v4331_v43 = vmax.f32 %v1368_v20, 0.0  ;;  %v1319_v6 = vmul.f32 2.0, %v572_v9  ;;  %v576_v20 = vpop.xlane.xlu1 %575  ;;  %v5024_v9 = vld [vmem:[#allocation61_spill] sm:$0xff] }
 0x1d9   : > { %v1828_v28 = vmax.f32 %v1812_v1, 0.0  ;;  %v1645_v29 = vmul.f32 %v1644_v8, %v4247_v36  ;;  %v1445_v14 = vmul.f32 %v4301_v62, %v1444_v30  ;;  %v4337_v63 = vmul.f32 %v4018_v17, %v5007_v32  ;;  %v5023_v32 = vld [vmem:[#allocation22_spill] sm:$0xff] }
 0x1da   : > { %vm1648_vm14 = vcmp.eq.f32.partialorder %v4247_v36, 0.0  ;;  %v1649_v7 = vand.u32 2147483648, %v4247_v36  ;;  %v1434_v23 = vmul.f32 0.5, %v1433_v37  ;;  %2249 = vrsqrt.f32 %v4331_v43 }
 0x1db   : > { %v1865_v38 = vperm.slane %v1827_v22, %v4295_v56  ;;  %v1867_v46 = vperm.slane %v1828_v28, %v1866_v60  ;;  %v1647_v34 = vsel %vm1646_vm13, %v4247_v36, %v1645_v29  ;;  %vm1438_vm15 = vcmp.eq.f32.partialorder %v4276_v55, inf  ;;  %v528_v44 = vpop.xlane.xlu0 %527 }
 0x1dc   : > { %v2248_v39 = vpop.eup %2247  ;;  %v1435_v5 = vsub.f32 1.5, %v1434_v23  ;;  %v1441_v4 = vand.u32 2147483648, %v4276_v55  ;;  %v1351_v17 = vmul.f32 %v4172_v54, %v1319_v6  ;;  %v4348_v18 = vadd.f32 %v1217_v33, %v5023_v32 }
 0x1dd   : > { %v4351_v35 = vsel %vm1868_vm11, %v1867_v46, %v1865_v38  ;;  %v1446_v11 = vmul.f32 0.5, %v1445_v14  ;;  %v1456_v10 = vmul.f32 %v2248_v39, %v4315_v45  ;;  %v4356_v61 = vmul.f32 %v4207_v53, %v5010_v49  ;;  %v5025_v38 = vld [vmem:[#allocation58_spill] sm:$0xff]  ;;  %v5026_v46 = vld [vmem:[#allocation16_spill] sm:$0xff] }
 0x1de   : > { %v4360_v30 = vsel %vm1648_vm14, %v1649_v7, %v1647_v34  ;;  %v1436_v54 = vmul.f32 %v2246_v24, %v1435_v5  ;;  %v1367_v33 = vsub.f32 %v5024_v9, %v1351_v17  ;;  %v1321_v60 = vmul.f32 2.0, %v576_v20  ;;  %v5027_v34 = vld [vmem:[#allocation18_spill] sm:$0xff] }
 0x1df   : > { %v1457_v22 = vmul.f32 %v2248_v39, %v1456_v10  ;;  %v1242_v1 = vmul.f32 2.0, %v530_v19  ;;  %v1241_v8 = vmul.f32 2.0, %v528_v44  ;;  %v4365_v37 = vmul.f32 %v4097_v59, %v5002_v2  ;;  %v580_v44 = vpop.xlane.xlu2 %579 }
 0x1e0   : > { %v2250_v6 = vpop.eup %2249  ;;  %v1437_v49 = vmul.f32 %v1436_v54, %v4276_v55  ;;  %v4368_v53 = vmax.f32 %v1367_v33, 0.0  ;;  %v1353_v36 = vmul.f32 %v4183_v42, %v1321_v60  ;;  %v4372_v24 = vadd.f32 %v1218_v31, %v4197_v47  ;;  %v532_v20 = vpop.xlane.xlu1 %531 }
 0x1e1   : > { %v1458_v28 = vmul.f32 0.5, %v1457_v22  ;;  %v1664_v29 = vmul.f32 %v2250_v6, %v4331_v43  ;;  %v1274_v14 = vmul.f32 %v4109_v16, %v1242_v1  ;;  %v1273_v7 = vmul.f32 %v4113_v57, %v1241_v8 }
 0x1e2   : > { %v1439_v59 = vsel %vm1438_vm15, %v4276_v55, %v1437_v49  ;;  %vm1440_vm0 = vcmp.eq.f32.partialorder %v4276_v55, 0.0  ;;  %2251 = vrsqrt.f32 %v4368_v53  ;;  %v1447_v2 = vsub.f32 1.5, %v1446_v11 }
 0x1e3   : > { %v4382_v42 = vsel %vm1440_vm0, %v1441_v4, %v1439_v59  ;;  %v1459_v47 = vsub.f32 1.5, %v1458_v28  ;;  %v1665_v31 = vmul.f32 %v2250_v6, %v1664_v29  ;;  %v1369_v16 = vsub.f32 %v5025_v38, %v1353_v36 }
 0x1e4   : > { %v1798_v23 = vsub.f32 %v4382_v42, %v4360_v30  ;;  %v1290_v57 = vsub.f32 %v5026_v46, %v1274_v14  ;;  %v1289_v5 = vsub.f32 %v5027_v34, %v1273_v7  ;;  %v1870_v55 = vadd.s32 4294967280, %v4295_v56 }
 0x1e5   : > { %v1460_v17 = vmul.f32 %v2248_v39, %v1459_v47  ;;  %v1666_v32 = vmul.f32 0.5, %v1665_v31  ;;  %v1813_v4 = vadd.f32 1.0, %v1797_v13  ;;  %v4393_v11 = vmax.f32 %v1369_v16, 0.0 }
 0x1e6   : > { %v4395_v10 = vmax.f32 %v1290_v57, 0.0  ;;  %vm1450_vm1 = vcmp.eq.f32.partialorder %v4262_v40, inf  ;;  %v4399_v19 = vadd.s32 4294967272, %v4295_v56  ;;  %v1448_v9 = vmul.f32 %v4301_v62, %v1447_v2  ;;  %v5028_v57 = vld [vmem:[#allocation48_spill] sm:$0xff] }
 0x1e7   : > { %v1461_v30 = vmul.f32 %v1460_v17, %v4315_v45  ;;  %v1667_v39 = vsub.f32 1.5, %v1666_v32  ;;  %vm1462_vm2 = vcmp.eq.f32.partialorder %v4315_v45, inf  ;;  %2253 = vrsqrt.f32 %v4393_v11 }
 0x1e8   : > { %v2252_v54 = vpop.eup %2251  ;;  %v4405_v3 = vmax.f32 %v1289_v5, 0.0  ;;  %v1243_v60 = vmul.f32 2.0, %v532_v20  ;;  %v1829_v22 = vmax.f32 %v1813_v4, 0.0  ;;  %vm1452_vm4 = vcmp.eq.f32.partialorder %v4262_v40, 0.0 }
 0x1e9   : > { %v1463_v15 = vsel %vm1462_vm2, %v4315_v45, %v1461_v30  ;;  %v1668_v13 = vmul.f32 %v2250_v6, %v1667_v39  ;;  %v1652_v33 = vmul.f32 %v2252_v54, %v4368_v53  ;;  %vm1464_vm5 = vcmp.eq.f32.partialorder %v4315_v45, 0.0  ;;  %v578_v6 = vpop.xlane.xlu0 %577 }
 0x1ea   : > { %v1465_v62 = vand.u32 2147483648, %v4315_v45  ;;  %2255 = vrsqrt.f32 %v4395_v10  ;;  %vm1670_vm7 = vcmp.eq.f32.partialorder %v4331_v43, inf  ;;  %vm1672_vm3 = vcmp.eq.f32.partialorder %v4331_v43, 0.0 }
 0x1eb   : > { %v1669_v1 = vmul.f32 %v1668_v13, %v4331_v43  ;;  %v1653_v8 = vmul.f32 %v2252_v54, %v1652_v33  ;;  %v1449_v49 = vmul.f32 %v1448_v9, %v4262_v40  ;;  %v1673_v28 = vand.u32 2147483648, %v4331_v43 }
 0x1ec   : > { %v1466_v36 = vsel %vm1464_vm5, %v1465_v62, %v1463_v15  ;;  %2257 = vrsqrt.f32 %v4405_v3  ;;  %v1275_v14 = vmul.f32 %v4121_v12, %v1243_v60  ;;  %v1323_v7 = vmul.f32 2.0, %v580_v44  ;;  %v582_v60 = vpop.xlane.xlu1 %581 }
 0x1ed   : > { %v1671_v29 = vsel %vm1670_vm7, %v4331_v43, %v1669_v1  ;;  %v1654_v45 = vmul.f32 0.5, %v1653_v8  ;;  %v2254_v59 = vpop.eup %2253  ;;  %v1453_v2 = vand.u32 2147483648, %v4262_v40  ;;  %v4423_v42 = vadd.s32 4294967256, %v4295_v56 }
 0x1ee   : > { %v1674_v47 = vsel %vm1672_vm3, %v1673_v28, %v1671_v29  ;;  %v1322_v31 = vmul.f32 2.0, %v578_v6  ;;  %v1676_v46 = vmul.f32 %v2254_v59, %v4393_v11  ;;  %v1291_v34 = vsub.f32 %v5028_v57, %v1275_v14 }
 0x1ef   : > { %v1800_v38 = vsub.f32 %v1466_v36, %v1674_v47  ;;  %v1655_v16 = vsub.f32 1.5, %v1654_v45  ;;  %v4427_v43 = vperm.slane %v1829_v22, %v1870_v55  ;;  %v1451_v12 = vsel %vm1450_vm1, %v4262_v40, %v1449_v49 }
 0x1f0   : > { %v2256_v5 = vpop.eup %2255  ;;  %v1355_v17 = vmul.f32 %v4241_v51, %v1323_v7  ;;  %v1354_v32 = vmul.f32 %v4252_v21, %v1322_v31  ;;  %v4435_v4 = vadd.s32 4294967264, %v4295_v56  ;;  %v1677_v30 = vmul.f32 %v2254_v59, %v1676_v46 }
 0x1f1   : > { %v1656_v20 = vmul.f32 %v2252_v54, %v1655_v16  ;;  %v1480_v39 = vmul.f32 %v2256_v5, %v4395_v10  ;;  %v1814_v15 = vadd.f32 1.0, %v1798_v23  ;;  %v4438_v13 = vmax.f32 %v1291_v34, 0.0  ;;  %v536_v54 = vpop.xlane.xlu2 %535  ;;  %v534_v1 = vpop.xlane.xlu0 %533 }
 0x1f2   : > { %v2258_v9 = vpop.eup %2257  ;;  %v1371_v55 = vsub.f32 %v4023_v41, %v1355_v17  ;;  %v1370_v33 = vsub.f32 %v4033_v48, %v1354_v32  ;;  %v1454_v51 = vsel %vm1452_vm4, %v1453_v2, %v1451_v12  ;;  %v1678_v44 = vmul.f32 0.5, %v1677_v30 }
 0x1f3   : > { %v1657_v21 = vmul.f32 %v1656_v20, %v4368_v53  ;;  %v1481_v22 = vmul.f32 %v2256_v5, %v1480_v39  ;;  %vm1658_vm6 = vcmp.eq.f32.partialorder %v4368_v53, inf  ;;  %v1661_v62 = vand.u32 2147483648, %v4368_v53 }
 0x1f4   : > { %v1468_v23 = vmul.f32 %v2258_v9, %v4405_v3  ;;  %2259 = vrsqrt.f32 %v4438_v13  ;;  %vm1660_vm8 = vcmp.eq.f32.partialorder %v4368_v53, 0.0  ;;  %v1679_v48 = vsub.f32 1.5, %v1678_v44  ;;  %v538_v17 = vpop.xlane.xlu1 %537 }
 0x1f5   : > { %v1659_v41 = vsel %vm1658_vm6, %v4368_v53, %v1657_v21  ;;  %v1482_v40 = vmul.f32 0.5, %v1481_v22  ;;  %v1830_v8 = vmax.f32 %v1814_v15, 0.0  ;;  %v4451_v36 = vmax.f32 %v1371_v55, 0.0 }
 0x1f6   : > { %v1662_v6 = vsel %vm1660_vm8, %v1661_v62, %v1659_v41  ;;  %v1469_v49 = vmul.f32 %v2258_v9, %v1468_v23  ;;  %v1680_v29 = vmul.f32 %v2254_v59, %v1679_v48  ;;  %v4453_v45 = vmax.f32 %v1370_v33, 0.0 }
 0x1f7   : > { %v1799_v28 = vsub.f32 %v1454_v51, %v1662_v6  ;;  %v4457_v14 = vmul.f32 %v4175_v52, %v4091_v25  ;;  %v1816_v7 = vadd.f32 1.0, %v1800_v38  ;;  %2261 = vrsqrt.f32 %v4451_v36  ;;  %v5029_v51 = vld [vmem:[#allocation62_spill] sm:$0xff] }
 0x1f8   : > { %v1470_v2 = vmul.f32 0.5, %v1469_v49  ;;  %v1324_v53 = vmul.f32 2.0, %v582_v60  ;;  %v1681_v47 = vmul.f32 %v1680_v29, %v4393_v11  ;;  %vm1682_vm9 = vcmp.eq.f32.partialorder %v4393_v11, inf }
 0x1f9   : > { %vm1684_vm10 = vcmp.eq.f32.partialorder %v4393_v11, 0.0  ;;  %v1483_v31 = vsub.f32 1.5, %v1482_v40  ;;  %v4464_v59 = vperm.slane %v1830_v8, %v4399_v19  ;;  %v1685_v46 = vand.u32 2147483648, %v4393_v11  ;;  %v586_v15 = vpop.xlane.xlu2 %585  ;;  %v584_v62 = vpop.xlane.xlu0 %583 }
 0x1fa   : > { %v2260_v16 = vpop.eup %2259  ;;  %v1471_v25 = vsub.f32 1.5, %v1470_v2  ;;  %2263 = vrsqrt.f32 %v4453_v45  ;;  %v1683_v52 = vsel %vm1682_vm9, %v4393_v11, %v1681_v47  ;;  %vm1474_vm12 = vcmp.eq.f32.partialorder %v4405_v3, inf }
 0x1fb   : > { %vm1476_vm11 = vcmp.eq.f32.partialorder %v4405_v3, 0.0  ;;  %v1492_v38 = vmul.f32 %v2260_v16, %v4438_v13  ;;  %v1832_v57 = vmax.f32 %v1816_v7, 0.0  ;;  %v1477_v12 = vand.u32 2147483648, %v4405_v3 }
 0x1fc   : > { %v1472_v34 = vmul.f32 %v2258_v9, %v1471_v25  ;;  %v1356_v19 = vmul.f32 %v4307_v27, %v1324_v53  ;;  %v4474_v32 = vadd.f32 1.0, %v1799_v28  ;;  %v1484_v20 = vmul.f32 %v2256_v5, %v1483_v31  ;;  %v5031_v53 = vld [vmem:[#allocation46_spill] sm:$0xff]  ;;  %v5032_v31 = vld [vmem:[#allocation32_spill] sm:$0xff] }
 0x1fd   : > { %v1493_v30 = vmul.f32 %v2260_v16, %v1492_v38  ;;  %v1245_v39 = vmul.f32 2.0, %v536_v54  ;;  %v2262_v55 = vpop.eup %2261  ;;  %v1686_v33 = vsel %vm1684_vm10, %v1685_v46, %v1683_v52  ;;  %v1244_v9 = vmul.f32 2.0, %v534_v1 }
 0x1fe   : > { %v1473_v60 = vmul.f32 %v1472_v34, %v4405_v3  ;;  %v1372_v21 = vsub.f32 %v5029_v51, %v1356_v19  ;;  %vm1486_vm13 = vcmp.eq.f32.partialorder %v4395_v10, inf  ;;  %v1700_v27 = vmul.f32 %v2262_v55, %v4451_v36 }
 0x1ff   : > { %v1494_v44 = vmul.f32 0.5, %v1493_v30  ;;  %v1277_v22 = vmul.f32 %v4126_v50, %v1245_v39  ;;  %v1246_v5 = vmul.f32 2.0, %v538_v17  ;;  %v1276_v41 = vmul.f32 %v4143_v58, %v1244_v9  ;;  %v5033_v17 = vld [vmem:[#allocation53_spill] sm:$0xff] }
 0x200   : > { %v2264_v54 = vpop.eup %2263  ;;  %v1475_v11 = vsel %vm1474_vm12, %v4405_v3, %v1473_v60  ;;  %v4486_v23 = vmax.f32 %v1372_v21, 0.0  ;;  %v1326_v48 = vmul.f32 2.0, %v586_v15  ;;  %v1701_v8 = vmul.f32 %v2262_v55, %v1700_v27  ;;  %v5030_v3 = vld [vmem:[#allocation44_spill] sm:$0xff] }
 0x201   : > { %v1478_v40 = vsel %vm1476_vm11, %v1477_v12, %v1475_v11  ;;  %v1495_v1 = vsub.f32 1.5, %v1494_v44  ;;  %v1688_v6 = vmul.f32 %v2264_v54, %v4453_v45  ;;  %vm1488_vm14 = vcmp.eq.f32.partialorder %v4395_v10, 0.0  ;;  %v540_v44 = vpop.xlane.xlu0 %539 }
 0x202   : > { %v1489_v50 = vand.u32 2147483648, %v4395_v10  ;;  %v1801_v49 = vsub.f32 %v1478_v40, %v1686_v33  ;;  %2265 = vrsqrt.f32 %v4486_v23  ;;  %v1485_v28 = vmul.f32 %v1484_v20, %v4395_v10 }
 0x203   : > { %vm1498_vm15 = vcmp.eq.f32.partialorder %v4438_v13, inf  ;;  %v1702_v58 = vmul.f32 0.5, %v1701_v8  ;;  %v1689_v29 = vmul.f32 %v2264_v54, %v1688_v6  ;;  %v1496_v7 = vmul.f32 %v2260_v16, %v1495_v1 }
 0x204   : > { %v1293_v2 = vsub.f32 %v5030_v3, %v1277_v22  ;;  %v1292_v47 = vsub.f32 %v5031_v53, %v1276_v41  ;;  %v1278_v46 = vmul.f32 %v5032_v31, %v1246_v5  ;;  %v4501_v25 = vperm.slane %v1832_v57, %v4423_v42  ;;  %v5034_v57 = vld [vmem:[#allocation37_spill] sm:$0xff] }
 0x205   : > { %v1831_v52 = vmax.f32 %v4474_v32, 0.0  ;;  %v1690_v38 = vmul.f32 0.5, %v1689_v29  ;;  %v1358_v34 = vmul.f32 %v4311_v26, %v1326_v48  ;;  %vm1500_vm0 = vcmp.eq.f32.partialorder %v4438_v13, 0.0  ;;  %v588_v32 = vpop.xlane.xlu1 %587 }
 0x206   : > { %v1703_v12 = vsub.f32 1.5, %v1702_v58  ;;  %v4506_v19 = vmax.f32 %v1293_v2, 0.0  ;;  %v4508_v16 = vmax.f32 %v1292_v47, 0.0  ;;  %v1294_v20 = vsub.f32 %v5033_v17, %v1278_v46 }
 0x207   : > { %v1501_v30 = vand.u32 2147483648, %v4438_v13  ;;  %v1709_v39 = vand.u32 2147483648, %v4451_v36  ;;  %v1691_v42 = vsub.f32 1.5, %v1690_v38  ;;  %v1374_v15 = vsub.f32 %v5034_v57, %v1358_v34 }
 0x208   : > { %v2266_v33 = vpop.eup %2265  ;;  %v1487_v26 = vsel %vm1486_vm13, %v4395_v10, %v1485_v28  ;;  %v1497_v60 = vmul.f32 %v1496_v7, %v4438_v13  ;;  %vm1694_vm1 = vcmp.eq.f32.partialorder %v4453_v45, inf  ;;  %2267 = vrsqrt.f32 %v4506_v19 }
 0x209   : > { %vm1706_vm2 = vcmp.eq.f32.partialorder %v4451_v36, inf  ;;  %v1692_v51 = vmul.f32 %v2264_v54, %v1691_v42  ;;  %vm1696_vm4 = vcmp.eq.f32.partialorder %v4453_v45, 0.0  ;;  %v1697_v21 = vand.u32 2147483648, %v4453_v45  ;;  %v5037_v42 = vld [vmem:[#allocation36_spill] sm:$0xff] }
 0x20a   : > { %v1712_v9 = vmul.f32 %v2266_v33, %v4486_v23  ;;  %v4525_v27 = vperm.slane %v1831_v52, %v4435_v4  ;;  %v4527_v22 = vadd.f32 1.0, %v1801_v49  ;;  %v1704_v5 = vmul.f32 %v2262_v55, %v1703_v12 }
 0x20b   : > { %2269 = vrsqrt.f32 %v4508_v16  ;;  %v4532_v11 = vsel %vm1488_vm14, %v1489_v50, %v1487_v26  ;;  %v1693_v54 = vmul.f32 %v1692_v51, %v4453_v45  ;;  %v4535_v48 = vmax.f32 %v1294_v20, 0.0  ;;  %v542_v50 = vpop.xlane.xlu2 %541  ;;  %v5035_v20 = vld [vmem:[#allocation25_spill] sm:$0xff]  ;;  %v5038_v51 = vld [vmem:[#allocation54_spill] sm:$0xff] }
 0x20c   : > { %v1713_v41 = vmul.f32 %v2266_v33, %v1712_v9  ;;  %v1499_v40 = vsel %vm1498_vm15, %v4438_v13, %v1497_v60  ;;  %v4540_v4 = vmax.f32 %v1374_v15, 0.0  ;;  %v1325_v1 = vmul.f32 2.0, %v584_v62  ;;  %v590_v9 = vpop.xlane.xlu0 %589 }
 0x20d   : > { %v1327_v8 = vmul.f32 2.0, %v588_v32  ;;  %vm1708_vm5 = vcmp.eq.f32.partialorder %v4451_v36, 0.0  ;;  %v1695_v10 = vsel %vm1694_vm1, %v4453_v45, %v1693_v54  ;;  %v1721_v6 = vand.u32 2147483648, %v4486_v23  ;;  %v544_v12 = vpop.xlane.xlu1 %543 }
 0x20e   : > { %v1714_v55 = vmul.f32 0.5, %v1713_v41  ;;  %2271 = vrsqrt.f32 %v4535_v48  ;;  %v2268_v49 = vpop.eup %2267  ;;  %v1833_v28 = vmax.f32 %v4527_v22, 0.0  ;;  %v1705_v58 = vmul.f32 %v1704_v5, %v4451_v36  ;;  %v5039_v41 = vld [vmem:[#allocation51_spill] sm:$0xff] }
 0x20f   : > { %v1698_v62 = vsel %vm1696_vm4, %v1697_v21, %v1695_v10  ;;  %2273 = vrsqrt.f32 %v4540_v4  ;;  %v4555_v29 = vsel %vm1500_vm0, %v1501_v30, %v1499_v40  ;;  %v1516_v2 = vmul.f32 %v2268_v49, %v4506_v19  ;;  %v5036_v30 = vld [vmem:[#allocation20_spill] sm:$0xff] }
 0x210   : > { %v1802_v7 = vsub.f32 %v4532_v11, %v1698_v62  ;;  %v1715_v3 = vsub.f32 1.5, %v1714_v55  ;;  %v1357_v47 = vmul.f32 %v4320_v0, %v1325_v1  ;;  %v1359_v31 = vmul.f32 %v4337_v63, %v1327_v8 }
 0x211   : > { %v2270_v53 = vpop.eup %2269  ;;  %v1248_v46 = vmul.f32 2.0, %v542_v50  ;;  %v1247_v52 = vmul.f32 2.0, %v540_v44  ;;  %v1517_v45 = vmul.f32 %v2268_v49, %v1516_v2  ;;  %v1525_v38 = vand.u32 2147483648, %v4506_v19 }
 0x212   : > { %v1504_v34 = vmul.f32 %v2270_v53, %v4508_v16  ;;  %v1513_v13 = vand.u32 2147483648, %v4508_v16  ;;  %v1707_v17 = vsel %vm1706_vm2, %v4451_v36, %v1705_v58  ;;  %vm1718_vm7 = vcmp.eq.f32.partialorder %v4486_v23, inf }
 0x213   : > { %v1373_v0 = vsub.f32 %v5035_v20, %v1357_v47  ;;  %v1375_v63 = vsub.f32 %v5036_v30, %v1359_v31  ;;  %v1280_v57 = vmul.f32 %v5037_v42, %v1248_v46  ;;  %v1716_v32 = vmul.f32 %v2266_v33, %v1715_v3  ;;  %v592_v31 = vpop.xlane.xlu2 %591 }
 0x214   : > { %v2272_v15 = vpop.eup %2271  ;;  %v1518_v26 = vmul.f32 0.5, %v1517_v45  ;;  %v1505_v60 = vmul.f32 %v2270_v53, %v1504_v34  ;;  %v1279_v21 = vmul.f32 %v5038_v51, %v1247_v52  ;;  %v1249_v10 = vmul.f32 2.0, %v544_v12 }
 0x215   : > { %v4572_v44 = vpop.eup %2273  ;;  %v1528_v5 = vmul.f32 %v2272_v15, %v4535_v48  ;;  %v4575_v11 = vmax.f32 %v1373_v0, 0.0  ;;  %v4577_v54 = vmax.f32 %v1375_v63, 0.0  ;;  %v1296_v40 = vsub.f32 %v5039_v41, %v1280_v57 }
 0x216   : > { %v1519_v1 = vsub.f32 1.5, %v1518_v26  ;;  %v1506_v8 = vmul.f32 0.5, %v1505_v60  ;;  %v1736_v33 = vmul.f32 %v4572_v44, %v4540_v4  ;;  %v4586_v55 = vsel %vm1708_vm5, %v1709_v39, %v1707_v17  ;;  %v5040_v39 = vld [vmem:[#allocation52_spill] sm:$0xff]  ;;  %v594_v26 = vpop.xlane.xlu1 %593 }
 0x217   : > { %vm1510_vm3 = vcmp.eq.f32.partialorder %v4508_v16, inf  ;;  %v1529_v50 = vmul.f32 %v2272_v15, %v1528_v5  ;;  %v1537_v58 = vand.u32 2147483648, %v4535_v48  ;;  %2275 = vrsqrt.f32 %v4575_v11  ;;  %v5041_v17 = vld [vmem:[#allocation24_spill] sm:$0xff] }
 0x218   : > { %v1717_v62 = vmul.f32 %v1716_v32, %v4486_v23  ;;  %v1507_v3 = vsub.f32 1.5, %v1506_v8  ;;  %v1737_v2 = vmul.f32 %v4572_v44, %v1736_v33  ;;  %v1745_v47 = vand.u32 2147483648, %v4540_v4  ;;  %v546_v8 = vpop.xlane.xlu0 %545 }
 0x219   : > { %v1530_v46 = vmul.f32 0.5, %v1529_v50  ;;  %2277 = vrsqrt.f32 %v4577_v54  ;;  %v4595_v36 = vmax.f32 %v1296_v40, 0.0  ;;  %v1295_v52 = vsub.f32 %v5040_v39, %v1279_v21 }
 0x21a   : > { %v1520_v45 = vmul.f32 %v2268_v49, %v1519_v1  ;;  %v1508_v34 = vmul.f32 %v2270_v53, %v1507_v3  ;;  %v1738_v12 = vmul.f32 0.5, %v1737_v2  ;;  %v1281_v20 = vmul.f32 %v5041_v17, %v1249_v10  ;;  %v5042_v49 = vld [vmem:[#allocation55_spill] sm:$0xff] }
 0x21b   : > { %v1531_v0 = vsub.f32 1.5, %v1530_v46  ;;  %2279 = vrsqrt.f32 %v4595_v36  ;;  %v4600_v30 = vmax.f32 %v1295_v52, 0.0  ;;  %v1329_v63 = vmul.f32 2.0, %v592_v31 }
 0x21c   : > { %v4602_v42 = vadd.f32 1.0, %v1802_v7  ;;  %v4607_v57 = vsel %vm1718_vm7, %v4486_v23, %v1717_v62  ;;  %v1509_v32 = vmul.f32 %v1508_v34, %v4508_v16  ;;  %v1297_v53 = vsub.f32 %v5042_v49, %v1281_v20 }
 0x21d   : > { %v2276_v60 = vpop.eup %2275  ;;  %v1733_v51 = vand.u32 2147483648, %v4575_v11  ;;  %2281 = vrsqrt.f32 %v4600_v30  ;;  %v1361_v21 = vmul.f32 %v4356_v61, %v1329_v63  ;;  %v1328_v5 = vmul.f32 2.0, %v590_v9  ;;  %v5044_v63 = vld [vmem:[#allocation28_spill] sm:$0xff] }
 0x21e   : > { %v1521_v7 = vmul.f32 %v1520_v45, %v4506_v19  ;;  %vm1522_vm6 = vcmp.eq.f32.partialorder %v4506_v19, inf  ;;  %v1739_v41 = vsub.f32 1.5, %v1738_v12  ;;  %v1724_v40 = vmul.f32 %v2276_v60, %v4575_v11 }
 0x21f   : > { %v4617_v1 = vmax.f32 %v1297_v53, 0.0  ;;  %v2278_v33 = vpop.eup %2277  ;;  %v1532_v10 = vmul.f32 %v2272_v15, %v1531_v0  ;;  %v1377_v50 = vsub.f32 %v4348_v18, %v1361_v21  ;;  %v1360_v62 = vmul.f32 %v4365_v37, %v1328_v5  ;;  %v5043_v37 = vld [vmem:[#allocation39_spill] sm:$0xff] }
 0x220   : > { %v1330_v3 = vmul.f32 2.0, %v594_v26  ;;  %v1511_v61 = vsel %vm1510_vm3, %v4508_v16, %v1509_v32  ;;  %vm1512_vm8 = vcmp.eq.f32.partialorder %v4508_v16, 0.0  ;;  %vm1534_vm9 = vcmp.eq.f32.partialorder %v4535_v48, inf  ;;  %v5045_v5 = vld [vmem:[#allocation19_spill] sm:$0xff] }
 0x221   : > { %v1725_v9 = vmul.f32 %v2276_v60, %v1724_v40  ;;  %v1748_v2 = vmul.f32 %v2278_v33, %v4577_v54  ;;  %2283 = vrsqrt.f32 %v4617_v1  ;;  %v2280_v31 = vpop.eup %2279  ;;  %vm1524_vm10 = vcmp.eq.f32.partialorder %v4506_v19, 0.0 }
 0x222   : > { %v4629_v18 = vmax.f32 %v1377_v50, 0.0  ;;  %v1376_v15 = vsub.f32 %v5043_v37, %v1360_v62  ;;  %v1362_v46 = vmul.f32 %v4457_v14, %v1330_v3  ;;  %v1250_v39 = vmul.f32 2.0, %v546_v8 }
 0x223   : > { %v1740_v52 = vmul.f32 %v4572_v44, %v1739_v41  ;;  %v1726_v45 = vmul.f32 0.5, %v1725_v9  ;;  %vm1730_vm12 = vcmp.eq.f32.partialorder %v4575_v11, inf  ;;  %v1749_v34 = vmul.f32 %v2278_v33, %v1748_v2  ;;  %v2282_v17 = vpop.eup %2281 }
 0x224   : > { %v1552_v12 = vmul.f32 %v2280_v31, %v4595_v36  ;;  %2285 = vrsqrt.f32 %v4629_v18  ;;  %v4637_v20 = vmax.f32 %v1376_v15, 0.0  ;;  %v1378_v0 = vsub.f32 %v4372_v24, %v1362_v46 }
 0x225   : > { %v1282_v32 = vmul.f32 %v5044_v63, %v1250_v39  ;;  %v1727_v49 = vsub.f32 1.5, %v1726_v45  ;;  %v1750_v14 = vmul.f32 0.5, %v1749_v34  ;;  %v1540_v44 = vmul.f32 %v2282_v17, %v4600_v30 }
 0x226   : > { %v1553_v53 = vmul.f32 %v2280_v31, %v1552_v12  ;;  %v1533_v26 = vmul.f32 %v1532_v10, %v4535_v48  ;;  %2287 = vrsqrt.f32 %v4637_v20  ;;  %v4644_v21 = vmax.f32 %v1378_v0, 0.0 }
 0x227   : > { %v1298_v41 = vsub.f32 %v5045_v5, %v1282_v32  ;;  %v2284_v40 = vpop.eup %2283  ;;  %v1728_v8 = vmul.f32 %v2276_v60, %v1727_v49  ;;  %v1751_v50 = vsub.f32 1.5, %v1750_v14  ;;  %v1541_v24 = vmul.f32 %v2282_v17, %v1540_v44 }
 0x228   : > { %v1554_v62 = vmul.f32 0.5, %v1553_v53  ;;  %v1523_v3 = vsel %vm1522_vm6, %v4506_v19, %v1521_v7  ;;  %v1741_v9 = vmul.f32 %v1740_v52, %v4540_v4  ;;  %2289 = vrsqrt.f32 %v4644_v21 }
 0x229   : > { %v4652_v10 = vmax.f32 %v1298_v41, 0.0  ;;  %v1729_v2 = vmul.f32 %v1728_v8, %v4575_v11  ;;  %v1752_v37 = vmul.f32 %v2278_v33, %v1751_v50  ;;  %v1542_v46 = vmul.f32 0.5, %v1541_v24 }
 0x22a   : > { %v1555_v15 = vsub.f32 1.5, %v1554_v62  ;;  %v4655_v39 = vpop.eup %2285  ;;  %v1564_v60 = vmul.f32 %v2284_v40, %v4617_v1  ;;  %v4663_v7 = vsel %vm1512_vm8, %v1513_v13, %v1511_v61  ;;  %v1535_v52 = vsel %vm1534_vm9, %v4535_v48, %v1533_v26 }
 0x22b   : > { %2291 = vrsqrt.f32 %v4652_v10  ;;  %vm1720_vm11 = vcmp.eq.f32.partialorder %v4486_v23, 0.0  ;;  %vm1742_vm13 = vcmp.eq.f32.partialorder %v4540_v4, inf  ;;  %v1543_v33 = vsub.f32 1.5, %v1542_v46 }
 0x22c   : > { %v1772_v45 = vmul.f32 %v4655_v39, %v4629_v18  ;;  %v4676_v34 = vsel %vm1524_vm10, %v1525_v38, %v1523_v3  ;;  %vm1536_vm14 = vcmp.eq.f32.partialorder %v4535_v48, 0.0  ;;  %v2288_v16 = vpop.eup %2287  ;;  %v1731_v13 = vsel %vm1730_vm12, %v4575_v11, %v1729_v2 }
 0x22d   : > { %vm1732_vm15 = vcmp.eq.f32.partialorder %v4575_v11, 0.0  ;;  %vm1546_vm0 = vcmp.eq.f32.partialorder %v4600_v30, inf  ;;  %vm1548_vm1 = vcmp.eq.f32.partialorder %v4600_v30, 0.0  ;;  %v1556_v61 = vmul.f32 %v2280_v31, %v1555_v15 }
 0x22e   : > { %v1753_v12 = vmul.f32 %v1752_v37, %v4577_v54  ;;  %v1544_v0 = vmul.f32 %v2282_v17, %v1543_v33  ;;  %v1760_v19 = vmul.f32 %v2288_v16, %v4637_v20  ;;  %v4689_v38 = vsel %vm1536_vm14, %v1537_v58, %v1535_v52  ;;  %v4691_v63 = vpop.eup %2289 }
 0x22f   : > { %v1549_v32 = vand.u32 2147483648, %v4600_v30  ;;  %v1557_v49 = vmul.f32 %v1556_v61, %v4595_v36  ;;  %vm1558_vm2 = vcmp.eq.f32.partialorder %v4595_v36, inf  ;;  %v1565_v14 = vmul.f32 %v2284_v40, %v1564_v60 }
 0x230   : > { %v1545_v31 = vmul.f32 %v1544_v0, %v4600_v30  ;;  %v1773_v53 = vmul.f32 %v4655_v39, %v1772_v45  ;;  %v1761_v17 = vmul.f32 %v2288_v16, %v1760_v19  ;;  %vm1560_vm4 = vcmp.eq.f32.partialorder %v4595_v36, 0.0 }
 0x231   : > { %v2292_v44 = vpop.eup %2291  ;;  %v1559_v48 = vsel %vm1558_vm2, %v4595_v36, %v1557_v49  ;;  %v1561_v58 = vand.u32 2147483648, %v4595_v36  ;;  %v1566_v26 = vmul.f32 0.5, %v1565_v14  ;;  %vm1570_vm5 = vcmp.eq.f32.partialorder %v4617_v1, inf }
 0x232   : > { %v1762_v5 = vmul.f32 0.5, %v1761_v17  ;;  %v1784_v41 = vmul.f32 %v4691_v63, %v4644_v21  ;;  %v1576_v8 = vmul.f32 %v2292_v44, %v4652_v10  ;;  %v1547_v50 = vsel %vm1546_vm0, %v4600_v30, %v1545_v31 }
 0x233   : > { %v4708_v62 = vsel %vm1560_vm4, %v1561_v58, %v1559_v48  ;;  %v1567_v24 = vsub.f32 1.5, %v1566_v26  ;;  %vm1572_vm7 = vcmp.eq.f32.partialorder %v4617_v1, 0.0  ;;  %v1573_v36 = vand.u32 2147483648, %v4617_v1 }
 0x234   : > { %v1763_v3 = vsub.f32 1.5, %v1762_v5  ;;  %v1550_v2 = vsel %vm1548_vm1, %v1549_v32, %v1547_v50  ;;  %v1577_v37 = vmul.f32 %v2292_v44, %v1576_v8  ;;  %v1585_v15 = vand.u32 2147483648, %v4652_v10 }
 0x235   : > { %v1568_v46 = vmul.f32 %v2284_v40, %v1567_v24  ;;  %v1722_v60 = vsel %vm1720_vm11, %v1721_v6, %v4607_v57  ;;  %v1743_v52 = vsel %vm1742_vm13, %v4540_v4, %v1741_v9  ;;  %vm1744_vm3 = vcmp.eq.f32.partialorder %v4540_v4, 0.0 }
 0x236   : > { %v1578_v33 = vmul.f32 0.5, %v1577_v37  ;;  %vm1582_vm6 = vcmp.eq.f32.partialorder %v4652_v10, inf  ;;  %v1734_v30 = vsel %vm1732_vm15, %v1733_v51, %v1731_v13  ;;  %v1746_v40 = vsel %vm1744_vm3, %v1745_v47, %v1743_v52 }
 0x237   : > { %vm1754_vm8 = vcmp.eq.f32.partialorder %v4577_v54, inf  ;;  %v1569_v23 = vmul.f32 %v1568_v46, %v4617_v1  ;;  %vm1756_vm9 = vcmp.eq.f32.partialorder %v4577_v54, 0.0  ;;  %v1764_v57 = vmul.f32 %v2288_v16, %v1763_v3 }
 0x238   : > { %v1755_v6 = vsel %vm1754_vm8, %v4577_v54, %v1753_v12  ;;  %v1579_v9 = vsub.f32 1.5, %v1578_v33  ;;  %v1757_v45 = vand.u32 2147483648, %v4577_v54  ;;  %vm1766_vm10 = vcmp.eq.f32.partialorder %v4637_v20, inf }
 0x239   : > { %v1774_v61 = vmul.f32 0.5, %v1773_v53  ;;  %v1571_v4 = vsel %vm1570_vm5, %v4617_v1, %v1569_v23  ;;  %vm1584_vm12 = vcmp.eq.f32.partialorder %v4652_v10, 0.0  ;;  %v1765_v11 = vmul.f32 %v1764_v57, %v4637_v20 }
 0x23a   : > { %vm1768_vm11 = vcmp.eq.f32.partialorder %v4637_v20, 0.0  ;;  %v1769_v47 = vand.u32 2147483648, %v4637_v20  ;;  %v1580_v51 = vmul.f32 %v2292_v44, %v1579_v9  ;;  %v1758_v16 = vsel %vm1756_vm9, %v1757_v45, %v1755_v6 }
 0x23b   : > { %v1775_v13 = vsub.f32 1.5, %v1774_v61  ;;  %vm1778_vm13 = vcmp.eq.f32.partialorder %v4629_v18, inf  ;;  %v1574_v54 = vsel %vm1572_vm7, %v1573_v36, %v1571_v4  ;;  %v1767_v12 = vsel %vm1766_vm10, %v4637_v20, %v1765_v11 }
 0x23c   : > { %vm1780_vm14 = vcmp.eq.f32.partialorder %v4629_v18, 0.0  ;;  %v1785_v0 = vmul.f32 %v4691_v63, %v1784_v41  ;;  %v1581_v19 = vmul.f32 %v1580_v51, %v4652_v10  ;;  %v1770_v32 = vsel %vm1768_vm11, %v1769_v47, %v1767_v12 }
 0x23d   : > { %v1776_v49 = vmul.f32 %v4655_v39, %v1775_v13  ;;  %v1781_v14 = vand.u32 2147483648, %v4629_v18  ;;  %vm1790_vm15 = vcmp.eq.f32.partialorder %v4644_v21, inf  ;;  %v1803_v1 = vsub.f32 %v4555_v29, %v4586_v55 }
 0x23e   : > { %v1786_v31 = vmul.f32 0.5, %v1785_v0  ;;  %v1804_v53 = vsub.f32 %v4663_v7, %v1722_v60  ;;  %vm1792_vm0 = vcmp.eq.f32.partialorder %v4644_v21, 0.0  ;;  %v1805_v17 = vsub.f32 %v4676_v34, %v1734_v30 }
 0x23f   : > { %v1777_v20 = vmul.f32 %v1776_v49, %v4629_v18  ;;  %v1806_v44 = vsub.f32 %v4689_v38, %v1746_v40  ;;  %v1583_v39 = vsel %vm1582_vm6, %v4652_v10, %v1581_v19  ;;  %v1807_v58 = vsub.f32 %v1550_v2, %v1758_v16 }
 0x240   : > { %v1787_v48 = vsub.f32 1.5, %v1786_v31  ;;  %v1808_v26 = vsub.f32 %v4708_v62, %v1770_v32  ;;  %v1819_v55 = vadd.f32 1.0, %v1803_v1  ;;  %v1820_v7 = vadd.f32 1.0, %v1804_v53 }
 0x241   : > { %v1779_v29 = vsel %vm1778_vm13, %v4629_v18, %v1777_v20  ;;  %v1821_v5 = vadd.f32 1.0, %v1805_v17  ;;  %v1822_v41 = vadd.f32 1.0, %v1806_v44  ;;  %v1823_v8 = vadd.f32 1.0, %v1807_v58 }
 0x242   : > { %v1782_v34 = vsel %vm1780_vm14, %v1781_v14, %v1779_v29  ;;  %v1788_v38 = vmul.f32 %v4691_v63, %v1787_v48  ;;  %v1586_v50 = vsel %vm1584_vm12, %v1585_v15, %v1583_v39  ;;  %v1793_v62 = vand.u32 2147483648, %v4644_v21 }
 0x243   : > { %v1809_v24 = vsub.f32 %v1574_v54, %v1782_v34  ;;  %v1824_v36 = vadd.f32 1.0, %v1808_v26  ;;  %v1834_v2 = vmax.f32 %v4602_v42, 0.0  ;;  %v1835_v37 = vmax.f32 %v1819_v55, 0.0 }
 0x244   : > { %v1789_v3 = vmul.f32 %v1788_v38, %v4644_v21  ;;  %v1836_v46 = vmax.f32 %v1820_v7, 0.0  ;;  %v1837_v60 = vmax.f32 %v1821_v5, 0.0  ;;  %v1838_v52 = vmax.f32 %v1822_v41, 0.0 }
 0x245   : > { %v1825_v18 = vadd.f32 1.0, %v1809_v24  ;;  %v1846_v63 = vstv %s2079_s10  ;;  %v1839_v10 = vmax.f32 %v1823_v8, 0.0  ;;  %vm1872_vm1 = vcmask 195712  }
 0x246   : > { %v1791_v33 = vsel %vm1790_vm15, %v4644_v21, %v1789_v3  ;;  %vm1876_vm2 = vcmask 261312   ;;  %v1840_v30 = vmax.f32 %v1824_v36, 0.0  ;;  %v1873_v42 = vsel %vm1872_vm1, %v4427_v43, %v4351_v35 }
 0x247   : > { %v1794_v15 = vsel %vm1792_vm0, %v1793_v62, %v1791_v33  ;;  %vm1880_vm4 = vcmask 326912   ;;  %v1847_v23 = vadd.s32 %v1846_v63, %v4295_v56  ;;  %v1877_v6 = vsel %vm1876_vm2, %v4464_v59, %v1873_v42 }
 0x248   : > { %v1810_v40 = vsub.f32 %v1586_v50, %v1794_v15  ;;  %vm1884_vm5 = vcmask 392512   ;;  %v1841_v57 = vmax.f32 %v1825_v18, 0.0  ;;  %v1881_v9 = vsel %vm1880_vm4, %v4525_v27, %v1877_v6 }
 0x249   : > { %v1886_v45 = vadd.s32 4294967248, %v4295_v56  ;;  %v1890_v61 = vadd.s32 4294967240, %v4295_v56  ;;  %v1885_v4 = vsel %vm1884_vm5, %v4501_v25, %v1881_v9  ;;  %vm1888_vm7 = vcmask 458112  }
 0x24a   : > { %v1826_v21 = vadd.f32 1.0, %v1810_v40  ;;  %v1894_v35 = vadd.s32 4294967232, %v4295_v56  ;;  %vm1892_vm3 = vcmask 523712   ;;  %v1898_v59 = vadd.s32 4294967224, %v4295_v56 }
 0x24b   : > { %v1887_v43 = vperm.slane %v1833_v28, %v1886_v45  ;;  %v1891_v11 = vperm.slane %v1834_v2, %v1890_v61  ;;  %vm1896_vm6 = vcmask 589312   ;;  %v1902_v27 = vadd.s32 4294967216, %v4295_v56 }
 0x24c   : > { %v1842_v47 = vmax.f32 %v1826_v21, 0.0  ;;  %v1895_v51 = vperm.slane %v1835_v37, %v1894_v35  ;;  %v1899_v13 = vperm.slane %v1836_v46, %v1898_v59  ;;  %vm1900_vm8 = vcmask 654912  }
 0x24d   : > { %v1889_v16 = vsel %vm1888_vm7, %v1887_v43, %v1885_v4  ;;  %v1906_v25 = vadd.s32 4294967208, %v4295_v56  ;;  %v1903_v12 = vperm.slane %v1837_v60, %v1902_v27  ;;  %vm1904_vm9 = vcmask 720512  }
 0x24e   : > { %v1893_v54 = vsel %vm1892_vm3, %v1891_v11, %v1889_v16  ;;  %v1910_v22 = vadd.s32 4294967200, %v4295_v56  ;;  %vm1908_vm10 = vcmask 786112   ;;  %v1914_v19 = vadd.s32 4294967192, %v4295_v56 }
 0x24f   : > { %v1897_v28 = vsel %vm1896_vm6, %v1895_v51, %v1893_v54  ;;  %v1907_v0 = vperm.slane %v1838_v52, %v1906_v25  ;;  %vm1912_vm12 = vcmask 851712   ;;  %v1918_v14 = vadd.s32 4294967184, %v4295_v56 }
 0x250   : > { %v1901_v32 = vsel %vm1900_vm8, %v1899_v13, %v1897_v28  ;;  %v1911_v49 = vperm.slane %v1839_v10, %v1910_v22  ;;  %v1915_v1 = vperm.slane %v1840_v30, %v1914_v19  ;;  %vm1916_vm11 = vcmask 917312  }
 0x251   : > { %v1905_v31 = vsel %vm1904_vm9, %v1903_v12, %v1901_v32  ;;  %v1922_v53 = vadd.s32 4294967176, %v4295_v56  ;;  %v1919_v17 = vperm.slane %v1841_v57, %v1918_v14  ;;  %vm1920_vm13 = vcmask 982912  }
 0x252   : > { %v1909_v20 = vsel %vm1908_vm10, %v1907_v0, %v1905_v31  ;;  %vm1924_vm14 = vcmask 1048512   ;;  %vm1848_vm15 = vcmp.lt.s32.totalorder %v1847_v23, 200 }
 0x253   : > { %v1913_v44 = vsel %vm1912_vm12, %v1911_v49, %v1909_v20  ;;  %v1923_v39 = vperm.slane %v1842_v47, %v1922_v53 }
 0x254   : > { %v1917_v48 = vsel %vm1916_vm11, %v1915_v1, %v1913_v44 }
 0x255   : > { %v1921_v58 = vsel %vm1920_vm13, %v1919_v17, %v1917_v48 }
 0x256   : > { %v1925_v26 = vsel %vm1924_vm14, %v1923_v39, %v1921_v58 }
 0x257   : > { %v1927_v29 = vsel %vm1848_vm15, %v1925_v26, 0.0 }
 0x258   : > { %1928 = vst [vmem:[%s291_s7] sm:$0x1] %v1927_v29 }
 0x259   : > { %2446 = shalt.err (!%p2443_p13)
}
 0x25a   : > { %2088 = dma.vmem_to_hbm [thread:$0]  (%p2568_p9), %s1941_s17, 16, %s1943_s29, %s1930_s16  }
 0x25b PF: > { %s1954_s26 = sand.u32 1, %s2477_s12   ;;  %p5046_p2 = scmp.ne.s32.totalorder %s4896_s25, 0 }
 0x25c   : > { %p5047_p3 = scmp.ge.s32.totalorder %s2489_s15, 2  ;;  %s1955_s9 = scalar_lea.sflag [#allocation4], %s1954_s26 }
 0x25e   : > { %p2091_p11 = pnand %p5047_p3, %p5046_p2 }
 0x260   : > { %p2092_p4 = pneg %p2091_p11 }
 0x262   : > { %2472 = dma.done.wait (%p2092_p4), %s1955_s9, 16  }
 0x263   : > { %2474 = vsyncadd (%p2092_p4), %s1955_s9, 4294967280  ;;  %p19_p7 = scmp.ge.s32.totalorder %s2545_s18, 4   ;;  %s5048_s12 = smov %s2481_s13 }
 0x264   : > { %s5049_s13 = smov %s2485_s14  ;;  %s5050_s14 = smov %s2557_s21 }
 0x265   : > { %s5051_s15 = smov %s2545_s18  ;;  %21 = sbr.rel (!%p19_p7) target bundleno = 7 (0x7), region = 101 }
 0x26a   :  { %1960 = vsyncpa [#allocation3], 1 }
 0x26b   :  { %1962 = vsyncpa [#allocation3 + $0x1], 1 }
 0x26c   :  { %1963 = vsyncpa [#allocation6], 1 }
 0x26d   :  { %1965 = vsyncpa [#allocation6 + $0x1], 1 }
 0x26e   :  { %1966 = vsyncpa [#allocation4], 1 }
 0x26f   :  { %1968 = vsyncpa [#allocation4 + $0x1], 1 }

</bundles_post_ra>
